<compile_context>
chip_gen: v7x
topology: tpu7x:2x2x1
jax: 0.10.0
libtpu: 0.0.40
codegen_flags: <defaults>
</compile_context>

<pallas_src>
import jax
import jax.numpy as jnp
from jax.experimental import pallas as pl
from jax.experimental.pallas import tpu as pltpu


def _make_residual_kernel(*, H, WC, K, Bt):
    """Fused Conv->BN->ReLU -> Conv->BN -> +x -> ReLU on a lane-dense (row, W*C) layout.

    Bt images are stacked along the row axis of one padded bf16 VMEM scratch:
        [p zero rows][img0: H rows][p zero][img1: H rows][p zero]...[img(Bt-1)][2p zero]
    Width taps + width zero-padding live in the banded (K, WC, WC) weight, so each conv
    is K full-row matmuls with M = Bt*(H+p) rows.
    """
    p = (K - 1) // 2
    stride = H + p              # rows per image block inside the stacked scratch
    M = Bt * stride             # matmul M dimension (valid rows + inter-image halo rows)
    Hs = M + 2 * p              # total scratch rows

    def conv(xp_ref, w_ref, b_ref):
        # Start from the first tap (no zero init) so the MXU result buffer can accumulate
        # taps in place on v7x; add the folded-BN bias once at the end.
        acc = jnp.dot(xp_ref[0:M, :], w_ref[0], preferred_element_type=jnp.float32)
        for dh in range(1, K):
            acc = acc + jnp.dot(xp_ref[dh:dh + M, :], w_ref[dh],
                                preferred_element_type=jnp.float32)
        return acc + b_ref[0, :]

    def kernel(x_ref, w1_ref, b1_ref, w2_ref, b2_ref, out_ref, xp_ref):
        # Zero ONLY the halo rows (top p, p between images, 2p tail). Re-done every grid
        # step so correctness never depends on which TensorCore ran which step.
        if p > 0:
            zrow = jnp.zeros((p, WC), xp_ref.dtype)
            xp_ref[0:p, :] = zrow
            for i in range(Bt - 1):
                r = p + i * stride + H
                xp_ref[r:r + p, :] = zrow
            xp_ref[M:Hs, :] = jnp.zeros((2 * p, WC), xp_ref.dtype)

        # ---- conv1 + folded BN + ReLU (intermediate never leaves VMEM) ----
        for i in range(Bt):
            xp_ref[p + i * stride:p + i * stride + H, :] = x_ref[i]
        h = jnp.maximum(conv(xp_ref, w1_ref, b1_ref), 0.0)

        # ---- conv2 + folded BN (reuse the scratch; halo rows are still zero) ----
        for i in range(Bt):
            xp_ref[p + i * stride:p + i * stride + H, :] = (
                h[i * stride:i * stride + H, :].astype(xp_ref.dtype))
        y = conv(xp_ref, w2_ref, b2_ref)

        # ---- residual add + final ReLU, full-128-lane bf16 stores ----
        for i in range(Bt):
            out_ref[i] = jnp.maximum(
                y[i * stride:i * stride + H, :] + x_ref[i].astype(jnp.float32),
                0.0).astype(out_ref.dtype)

    return kernel


def _pick_batch_tile(B, H, p, target_rows=256):
    """Largest divisor of B keeping the stacked matmul M = Bt*(H+p) near `target_rows`
    (>=128 feeds v5e's 128-row MXU; ~256 for v6e/v7x)."""
    best = 1
    for bt in range(1, B + 1):
        if B % bt == 0 and bt * (H + p) <= max(target_rows, H + p):
            best = bt
    return best


def residual_pallas(x_packed, wband1, bias1, wband2, bias2, *, batch_tile=None):
    """x_packed: (B, H, W*C) bf16; wband*: (K, W*C, W*C) bf16 banded, BN-folded weights;
    bias*: (1, W*C) f32 lane-packed folded-BN bias. Returns (B, H, W*C) bf16."""
    B, H, WC = x_packed.shape
    K = wband1.shape[0]
    p = (K - 1) // 2

    Bt = batch_tile if batch_tile is not None else _pick_batch_tile(B, H, p)
    assert B % Bt == 0, (B, Bt)
    Hs = Bt * (H + p) + 2 * p

    kernel = _make_residual_kernel(H=H, WC=WC, K=K, Bt=Bt)

    xspec = pl.BlockSpec((Bt, H, WC), lambda n: (n, 0, 0))
    # Weight / bias index maps are constant across the grid, so they are not re-DMA'd.
    # (pl.Buffered(1) would also single-buffer them; unnecessary at 96 KiB per conv.)
    wspec = pl.BlockSpec((K, WC, WC), lambda n: (0, 0, 0))
    bspec = pl.BlockSpec((1, WC), lambda n: (0, 0))

    return pl.pallas_call(
        kernel,
        out_shape=jax.ShapeDtypeStruct((B, H, WC), jnp.bfloat16),
        grid=(B // Bt,),
        in_specs=[xspec, wspec, bspec, wspec, bspec],
        out_specs=xspec,
        scratch_shapes=[pltpu.VMEM((Hs, WC), jnp.bfloat16)],  # stacked padded activations
        compiler_params=pltpu.CompilerParams(
            dimension_semantics=("parallel",),
        ),
    )(x_packed, wband1, bias1, wband2, bias2)


def init_residual_params(key, channels, kernel_size, eps=1e-5):
    """Deterministic init matching nn.Conv2d / nn.BatchNorm2d shapes; BN folded to scale/bias."""
    C, K = channels, kernel_size
    ks = jax.random.split(key, 12)
    params = {}
    for i, tag in enumerate(("1", "2")):
        k0 = ks[6 * i: 6 * (i + 1)]
        w_oihw = jax.random.normal(k0[0], (C, C, K, K), jnp.float32) * 0.1
        conv_b = jax.random.normal(k0[1], (C,), jnp.float32) * 0.1
        gamma = 1.0 + 0.1 * jax.random.normal(k0[2], (C,), jnp.float32)
        beta = 0.1 * jax.random.normal(k0[3], (C,), jnp.float32)
        r_mean = 0.1 * jax.random.normal(k0[4], (C,), jnp.float32)
        r_var = 1.0 + 0.1 * jax.random.uniform(k0[5], (C,), jnp.float32)
        scale = gamma / jnp.sqrt(r_var + eps)          # inference-mode BN fold
        bias = beta + (conv_b - r_mean) * scale
        params[f"w{tag}_oihw"] = w_oihw
        params[f"scale{tag}"] = scale
        params[f"bias{tag}"] = bias
    return params


def pack_kernel_params(params, width):
    """Fold BN scale into the weights, then fold the width taps + width zero padding into
    a banded (K, W*C, W*C) bf16 matrix per kernel row; lane-pack the bias to (1, W*C)."""
    packed = {}
    for tag in ("1", "2"):
        w_oihw = params[f"w{tag}_oihw"]
        scale = params[f"scale{tag}"]
        bias = params[f"bias{tag}"]
        C = w_oihw.shape[0]
        K = w_oihw.shape[-1]
        p = (K - 1) // 2
        w_hwio = jnp.transpose(w_oihw, (2, 3, 1, 0)) * scale[None, None, None, :]
        a = jnp.arange(width)[None, :, None]
        b = jnp.arange(width)[None, None, :]
        dw = jnp.arange(K)[:, None, None]
        band = (a == b + dw - p).astype(w_hwio.dtype)              # (K, W, W) band selector
        # wband[dh, a*C+ci, b*C+co] = sum_dw [a == b+dw-p] * w_hwio[dh, dw, ci, co]
        wband = jnp.einsum("wab,hwio->haibo", band, w_hwio).reshape(K, width * C, width * C)
        packed[f"wband{tag}"] = wband.astype(jnp.bfloat16)
        packed[f"biasp{tag}"] = jnp.tile(bias, width).reshape(1, width * C).astype(jnp.float32)
    return packed


@jax.jit
def residual_forward(x_nchw, kparams):
    """NCHW f32 in / NCHW f32 out (like the PyTorch module); packed bf16 NHWC inside."""
    B, C, H, W = x_nchw.shape
    x = jnp.transpose(x_nchw, (0, 2, 3, 1)).reshape(B, H, W * C).astype(jnp.bfloat16)
    out = residual_pallas(x, kparams["wband1"], kparams["biasp1"],
                          kparams["wband2"], kparams["biasp2"])
    return jnp.transpose(out.reshape(B, H, W, C).astype(jnp.float32), (0, 3, 1, 2))


def residual_reference(x_nchw, params):
    """Pure-JAX f32 reference (lax conv) matching the PyTorch forward semantics."""
    def block(x, tag, relu):
        w = params[f"w{tag}_oihw"]
        K = w.shape[-1]
        p = (K - 1) // 2
        y = jax.lax.conv_general_dilated(
            x, w, window_strides=(1, 1), padding=[(p, p), (p, p)],
            dimension_numbers=("NCHW", "OIHW", "NCHW"))
        s = params[f"scale{tag}"][None, :, None, None]
        b = params[f"bias{tag}"][None, :, None, None]
        y = y * s + b
        return jnp.maximum(y, 0.0) if relu else y

    h = block(x_nchw, "1", True)
    out = block(h, "2", False)
    return jnp.maximum(out + x_nchw, 0.0)


if __name__ == "__main__":
    # W * C = 128 -> lane-dense packed layout; B=16 with Bt=8 -> grid=(2,) (both v7x cores
    # busy) and matmul M = 8*(16+1) = 136 rows per tap.
    B, C, H, W = 16, 8, 16, 16
    K = 3

    key = jax.random.PRNGKey(0)
    kx, kp = jax.random.split(key)
    x = jax.random.normal(kx, (B, C, H, W), jnp.float32)

    params = init_residual_params(kp, C, K)
    kparams = pack_kernel_params(params, W)

    out = jax.block_until_ready(residual_forward(x, kparams))
    ref = residual_reference(x, params)

    assert out.shape == (B, C, H, W)
    max_err = float(jnp.max(jnp.abs(out - ref)))
    assert jnp.allclose(out, ref, atol=5e-2, rtol=5e-2), max_err

    print("KERNEL_OK")
</pallas_src>

<mosaic_0001>
module attributes {stable_mosaic.version = 11 : i64} {
  func.func @kernel(%arg0: i32, %arg1: memref<8x16x128xbf16, #tpu.memory_space<vmem>>, %arg2: memref<3x128x128xbf16, #tpu.memory_space<vmem>>, %arg3: memref<1x128xf32, #tpu.memory_space<vmem>>, %arg4: memref<3x128x128xbf16, #tpu.memory_space<vmem>>, %arg5: memref<1x128xf32, #tpu.memory_space<vmem>>, %arg6: memref<8x16x128xbf16, #tpu.memory_space<vmem>>, %arg7: memref<138x128xbf16, #tpu.memory_space<vmem>>) attributes {dimension_semantics = [#tpu.dimension_semantics<parallel>], iteration_bounds = array<i64: 2>, scalar_prefetch = 0 : i64, scratch_operands = 1 : i64, tpu.core_type = #tpu.core_type<tc>, window_params = [{transform_indices = @transform_0, window_bounds = array<i64: 8, 16, 128>}, {pipeline_mode = #tpu.pipeline_mode<synchronous>, transform_indices = @transform_1, window_bounds = array<i64: 3, 128, 128>}, {pipeline_mode = #tpu.pipeline_mode<synchronous>, transform_indices = @transform_2, window_bounds = array<i64: 1, 128>}, {pipeline_mode = #tpu.pipeline_mode<synchronous>, transform_indices = @transform_3, window_bounds = array<i64: 3, 128, 128>}, {pipeline_mode = #tpu.pipeline_mode<synchronous>, transform_indices = @transform_4, window_bounds = array<i64: 1, 128>}, {transform_indices = @transform_5, window_bounds = array<i64: 8, 16, 128>}]} {
    %cst = arith.constant 0.000000e+00 : bf16
    %0 = vector.broadcast %cst : bf16 to vector<1x128xbf16>
    %c0 = arith.constant 0 : index
    %c0_0 = arith.constant 0 : index
    %1 = vector.load %arg7[%c0, %c0_0] : memref<138x128xbf16, #tpu.memory_space<vmem>>, vector<1x128xbf16>
    tpu.vector_store %arg7[%c0, %c0_0], %0 {strides = array<i32>} : memref<138x128xbf16, #tpu.memory_space<vmem>>, vector<1x128xbf16>,
    %c17 = arith.constant 17 : index
    %c0_1 = arith.constant 0 : index
    %2 = vector.load %arg7[%c17, %c0_1] : memref<138x128xbf16, #tpu.memory_space<vmem>>, vector<1x128xbf16>
    tpu.vector_store %arg7[%c17, %c0_1], %0 {strides = array<i32>} : memref<138x128xbf16, #tpu.memory_space<vmem>>, vector<1x128xbf16>,
    %c34 = arith.constant 34 : index
    %c0_2 = arith.constant 0 : index
    %3 = vector.load %arg7[%c34, %c0_2] : memref<138x128xbf16, #tpu.memory_space<vmem>>, vector<1x128xbf16>
    tpu.vector_store %arg7[%c34, %c0_2], %0 {strides = array<i32>} : memref<138x128xbf16, #tpu.memory_space<vmem>>, vector<1x128xbf16>,
    %c51 = arith.constant 51 : index
    %c0_3 = arith.constant 0 : index
    %4 = vector.load %arg7[%c51, %c0_3] : memref<138x128xbf16, #tpu.memory_space<vmem>>, vector<1x128xbf16>
    tpu.vector_store %arg7[%c51, %c0_3], %0 {strides = array<i32>} : memref<138x128xbf16, #tpu.memory_space<vmem>>, vector<1x128xbf16>,
    %c68 = arith.constant 68 : index
    %c0_4 = arith.constant 0 : index
    %5 = vector.load %arg7[%c68, %c0_4] : memref<138x128xbf16, #tpu.memory_space<vmem>>, vector<1x128xbf16>
    tpu.vector_store %arg7[%c68, %c0_4], %0 {strides = array<i32>} : memref<138x128xbf16, #tpu.memory_space<vmem>>, vector<1x128xbf16>,
    %c85 = arith.constant 85 : index
    %c0_5 = arith.constant 0 : index
    %6 = vector.load %arg7[%c85, %c0_5] : memref<138x128xbf16, #tpu.memory_space<vmem>>, vector<1x128xbf16>
    tpu.vector_store %arg7[%c85, %c0_5], %0 {strides = array<i32>} : memref<138x128xbf16, #tpu.memory_space<vmem>>, vector<1x128xbf16>,
    %c102 = arith.constant 102 : index
    %c0_6 = arith.constant 0 : index
    %7 = vector.load %arg7[%c102, %c0_6] : memref<138x128xbf16, #tpu.memory_space<vmem>>, vector<1x128xbf16>
    tpu.vector_store %arg7[%c102, %c0_6], %0 {strides = array<i32>} : memref<138x128xbf16, #tpu.memory_space<vmem>>, vector<1x128xbf16>,
    %c119 = arith.constant 119 : index
    %c0_7 = arith.constant 0 : index
    %8 = vector.load %arg7[%c119, %c0_7] : memref<138x128xbf16, #tpu.memory_space<vmem>>, vector<1x128xbf16>
    tpu.vector_store %arg7[%c119, %c0_7], %0 {strides = array<i32>} : memref<138x128xbf16, #tpu.memory_space<vmem>>, vector<1x128xbf16>,
    %cst_8 = arith.constant 0.000000e+00 : bf16
    %9 = vector.broadcast %cst_8 : bf16 to vector<2x128xbf16>
    %c136 = arith.constant 136 : index
    %c0_9 = arith.constant 0 : index
    %10 = vector.load %arg7[%c136, %c0_9] : memref<138x128xbf16, #tpu.memory_space<vmem>>, vector<2x128xbf16>
    tpu.vector_store %arg7[%c136, %c0_9], %9 {strides = array<i32>} : memref<138x128xbf16, #tpu.memory_space<vmem>>, vector<2x128xbf16>,
    %c0_10 = arith.constant 0 : index
    %c0_11 = arith.constant 0 : index
    %c0_12 = arith.constant 0 : index
    %11 = vector.load %arg1[%c0_10, %c0_11, %c0_12] : memref<8x16x128xbf16, #tpu.memory_space<vmem>>, vector<1x16x128xbf16>
    %12 = vector.shape_cast %11 : vector<1x16x128xbf16> to vector<16x128xbf16>
    %c1 = arith.constant 1 : index
    %c0_13 = arith.constant 0 : index
    %13 = vector.load %arg7[%c1, %c0_13] : memref<138x128xbf16, #tpu.memory_space<vmem>>, vector<16x128xbf16>
    tpu.vector_store %arg7[%c1, %c0_13], %12 {strides = array<i32>} : memref<138x128xbf16, #tpu.memory_space<vmem>>, vector<16x128xbf16>,
    %c1_14 = arith.constant 1 : index
    %c0_15 = arith.constant 0 : index
    %c0_16 = arith.constant 0 : index
    %14 = vector.load %arg1[%c1_14, %c0_15, %c0_16] : memref<8x16x128xbf16, #tpu.memory_space<vmem>>, vector<1x16x128xbf16>
    %15 = vector.shape_cast %14 : vector<1x16x128xbf16> to vector<16x128xbf16>
    %c18 = arith.constant 18 : index
    %c0_17 = arith.constant 0 : index
    %16 = vector.load %arg7[%c18, %c0_17] : memref<138x128xbf16, #tpu.memory_space<vmem>>, vector<16x128xbf16>
    tpu.vector_store %arg7[%c18, %c0_17], %15 {strides = array<i32>} : memref<138x128xbf16, #tpu.memory_space<vmem>>, vector<16x128xbf16>,
    %c2 = arith.constant 2 : index
    %c0_18 = arith.constant 0 : index
    %c0_19 = arith.constant 0 : index
    %17 = vector.load %arg1[%c2, %c0_18, %c0_19] : memref<8x16x128xbf16, #tpu.memory_space<vmem>>, vector<1x16x128xbf16>
    %18 = vector.shape_cast %17 : vector<1x16x128xbf16> to vector<16x128xbf16>
    %c35 = arith.constant 35 : index
    %c0_20 = arith.constant 0 : index
    %19 = vector.load %arg7[%c35, %c0_20] : memref<138x128xbf16, #tpu.memory_space<vmem>>, vector<16x128xbf16>
    tpu.vector_store %arg7[%c35, %c0_20], %18 {strides = array<i32>} : memref<138x128xbf16, #tpu.memory_space<vmem>>, vector<16x128xbf16>,
    %c3 = arith.constant 3 : index
    %c0_21 = arith.constant 0 : index
    %c0_22 = arith.constant 0 : index
    %20 = vector.load %arg1[%c3, %c0_21, %c0_22] : memref<8x16x128xbf16, #tpu.memory_space<vmem>>, vector<1x16x128xbf16>
    %21 = vector.shape_cast %20 : vector<1x16x128xbf16> to vector<16x128xbf16>
    %c52 = arith.constant 52 : index
    %c0_23 = arith.constant 0 : index
    %22 = vector.load %arg7[%c52, %c0_23] : memref<138x128xbf16, #tpu.memory_space<vmem>>, vector<16x128xbf16>
    tpu.vector_store %arg7[%c52, %c0_23], %21 {strides = array<i32>} : memref<138x128xbf16, #tpu.memory_space<vmem>>, vector<16x128xbf16>,
    %c4 = arith.constant 4 : index
    %c0_24 = arith.constant 0 : index
    %c0_25 = arith.constant 0 : index
    %23 = vector.load %arg1[%c4, %c0_24, %c0_25] : memref<8x16x128xbf16, #tpu.memory_space<vmem>>, vector<1x16x128xbf16>
    %24 = vector.shape_cast %23 : vector<1x16x128xbf16> to vector<16x128xbf16>
    %c69 = arith.constant 69 : index
    %c0_26 = arith.constant 0 : index
    %25 = vector.load %arg7[%c69, %c0_26] : memref<138x128xbf16, #tpu.memory_space<vmem>>, vector<16x128xbf16>
    tpu.vector_store %arg7[%c69, %c0_26], %24 {strides = array<i32>} : memref<138x128xbf16, #tpu.memory_space<vmem>>, vector<16x128xbf16>,
    %c5 = arith.constant 5 : index
    %c0_27 = arith.constant 0 : index
    %c0_28 = arith.constant 0 : index
    %26 = vector.load %arg1[%c5, %c0_27, %c0_28] : memref<8x16x128xbf16, #tpu.memory_space<vmem>>, vector<1x16x128xbf16>
    %27 = vector.shape_cast %26 : vector<1x16x128xbf16> to vector<16x128xbf16>
    %c86 = arith.constant 86 : index
    %c0_29 = arith.constant 0 : index
    %28 = vector.load %arg7[%c86, %c0_29] : memref<138x128xbf16, #tpu.memory_space<vmem>>, vector<16x128xbf16>
    tpu.vector_store %arg7[%c86, %c0_29], %27 {strides = array<i32>} : memref<138x128xbf16, #tpu.memory_space<vmem>>, vector<16x128xbf16>,
    %c6 = arith.constant 6 : index
    %c0_30 = arith.constant 0 : index
    %c0_31 = arith.constant 0 : index
    %29 = vector.load %arg1[%c6, %c0_30, %c0_31] : memref<8x16x128xbf16, #tpu.memory_space<vmem>>, vector<1x16x128xbf16>
    %30 = vector.shape_cast %29 : vector<1x16x128xbf16> to vector<16x128xbf16>
    %c103 = arith.constant 103 : index
    %c0_32 = arith.constant 0 : index
    %31 = vector.load %arg7[%c103, %c0_32] : memref<138x128xbf16, #tpu.memory_space<vmem>>, vector<16x128xbf16>
    tpu.vector_store %arg7[%c103, %c0_32], %30 {strides = array<i32>} : memref<138x128xbf16, #tpu.memory_space<vmem>>, vector<16x128xbf16>,
    %c7 = arith.constant 7 : index
    %c0_33 = arith.constant 0 : index
    %c0_34 = arith.constant 0 : index
    %32 = vector.load %arg1[%c7, %c0_33, %c0_34] : memref<8x16x128xbf16, #tpu.memory_space<vmem>>, vector<1x16x128xbf16>
    %33 = vector.shape_cast %32 : vector<1x16x128xbf16> to vector<16x128xbf16>
    %c120 = arith.constant 120 : index
    %c0_35 = arith.constant 0 : index
    %34 = vector.load %arg7[%c120, %c0_35] : memref<138x128xbf16, #tpu.memory_space<vmem>>, vector<16x128xbf16>
    tpu.vector_store %arg7[%c120, %c0_35], %33 {strides = array<i32>} : memref<138x128xbf16, #tpu.memory_space<vmem>>, vector<16x128xbf16>,
    %c0_36 = arith.constant 0 : index
    %c0_37 = arith.constant 0 : index
    %35 = vector.load %arg7[%c0_36, %c0_37] : memref<138x128xbf16, #tpu.memory_space<vmem>>, vector<136x128xbf16>
    %c0_38 = arith.constant 0 : index
    %c0_39 = arith.constant 0 : index
    %c0_40 = arith.constant 0 : index
    %36 = vector.load %arg2[%c0_38, %c0_39, %c0_40] : memref<3x128x128xbf16, #tpu.memory_space<vmem>>, vector<1x128x128xbf16>
    %37 = vector.shape_cast %36 : vector<1x128x128xbf16> to vector<128x128xbf16>
    %cst_41 = arith.constant dense<0.000000e+00> : vector<136x128xf32>
    %38 = tpu.matmul %35, %37, %cst_41 {dimension_numbers = #tpu.dot_dimension_numbers<[1], [0], [0], [1], [0, 0, 1, 1], [], []>} : vector<136x128xbf16>, vector<128x128xbf16>, vector<136x128xf32> -> vector<136x128xf32>
    %c1_42 = arith.constant 1 : index
    %c0_43 = arith.constant 0 : index
    %39 = vector.load %arg7[%c1_42, %c0_43] : memref<138x128xbf16, #tpu.memory_space<vmem>>, vector<136x128xbf16>
    %c1_44 = arith.constant 1 : index
    %c0_45 = arith.constant 0 : index
    %c0_46 = arith.constant 0 : index
    %40 = vector.load %arg2[%c1_44, %c0_45, %c0_46] : memref<3x128x128xbf16, #tpu.memory_space<vmem>>, vector<1x128x128xbf16>
    %41 = vector.shape_cast %40 : vector<1x128x128xbf16> to vector<128x128xbf16>
    %cst_47 = arith.constant dense<0.000000e+00> : vector<136x128xf32>
    %42 = tpu.matmul %39, %41, %cst_47 {dimension_numbers = #tpu.dot_dimension_numbers<[1], [0], [0], [1], [0, 0, 1, 1], [], []>} : vector<136x128xbf16>, vector<128x128xbf16>, vector<136x128xf32> -> vector<136x128xf32>
    %43 = arith.addf %38, %42 : vector<136x128xf32>
    %c2_48 = arith.constant 2 : index
    %c0_49 = arith.constant 0 : index
    %44 = vector.load %arg7[%c2_48, %c0_49] : memref<138x128xbf16, #tpu.memory_space<vmem>>, vector<136x128xbf16>
    %c2_50 = arith.constant 2 : index
    %c0_51 = arith.constant 0 : index
    %c0_52 = arith.constant 0 : index
    %45 = vector.load %arg2[%c2_50, %c0_51, %c0_52] : memref<3x128x128xbf16, #tpu.memory_space<vmem>>, vector<1x128x128xbf16>
    %46 = vector.shape_cast %45 : vector<1x128x128xbf16> to vector<128x128xbf16>
    %cst_53 = arith.constant dense<0.000000e+00> : vector<136x128xf32>
    %47 = tpu.matmul %44, %46, %cst_53 {dimension_numbers = #tpu.dot_dimension_numbers<[1], [0], [0], [1], [0, 0, 1, 1], [], []>} : vector<136x128xbf16>, vector<128x128xbf16>, vector<136x128xf32> -> vector<136x128xf32>
    %48 = arith.addf %43, %47 : vector<136x128xf32>
    %c0_54 = arith.constant 0 : index
    %c0_55 = arith.constant 0 : index
    %49 = vector.load %arg3[%c0_54, %c0_55] : memref<1x128xf32, #tpu.memory_space<vmem>>, vector<1x128xf32>
    %50 = vector.shape_cast %49 : vector<1x128xf32> to vector<128xf32>
    %51 = vector.shape_cast %50 : vector<128xf32> to vector<1x128xf32>
    %52 = vector.broadcast %51 : vector<1x128xf32> to vector<136x128xf32>
    %53 = arith.addf %48, %52 : vector<136x128xf32>
    %cst_56 = arith.constant 0.000000e+00 : f32
    %54 = vector.broadcast %cst_56 : f32 to vector<136x128xf32>
    %55 = arith.maximumf %53, %54 : vector<136x128xf32>
    %56 = vector.extract_strided_slice %55 {offsets = [0, 0], sizes = [16, 128], strides = [1, 1]} : vector<136x128xf32> to vector<16x128xf32>
    %57 = arith.truncf %56 : vector<16x128xf32> to vector<16x128xbf16>
    %c1_57 = arith.constant 1 : index
    %c0_58 = arith.constant 0 : index
    %58 = vector.load %arg7[%c1_57, %c0_58] : memref<138x128xbf16, #tpu.memory_space<vmem>>, vector<16x128xbf16>
    tpu.vector_store %arg7[%c1_57, %c0_58], %57 {strides = array<i32>} : memref<138x128xbf16, #tpu.memory_space<vmem>>, vector<16x128xbf16>,
    %59 = vector.extract_strided_slice %55 {offsets = [17, 0], sizes = [16, 128], strides = [1, 1]} : vector<136x128xf32> to vector<16x128xf32>
    %60 = arith.truncf %59 : vector<16x128xf32> to vector<16x128xbf16>
    %c18_59 = arith.constant 18 : index
    %c0_60 = arith.constant 0 : index
    %61 = vector.load %arg7[%c18_59, %c0_60] : memref<138x128xbf16, #tpu.memory_space<vmem>>, vector<16x128xbf16>
    tpu.vector_store %arg7[%c18_59, %c0_60], %60 {strides = array<i32>} : memref<138x128xbf16, #tpu.memory_space<vmem>>, vector<16x128xbf16>,
    %62 = vector.extract_strided_slice %55 {offsets = [34, 0], sizes = [16, 128], strides = [1, 1]} : vector<136x128xf32> to vector<16x128xf32>
    %63 = arith.truncf %62 : vector<16x128xf32> to vector<16x128xbf16>
    %c35_61 = arith.constant 35 : index
    %c0_62 = arith.constant 0 : index
    %64 = vector.load %arg7[%c35_61, %c0_62] : memref<138x128xbf16, #tpu.memory_space<vmem>>, vector<16x128xbf16>
    tpu.vector_store %arg7[%c35_61, %c0_62], %63 {strides = array<i32>} : memref<138x128xbf16, #tpu.memory_space<vmem>>, vector<16x128xbf16>,
    %65 = vector.extract_strided_slice %55 {offsets = [51, 0], sizes = [16, 128], strides = [1, 1]} : vector<136x128xf32> to vector<16x128xf32>
    %66 = arith.truncf %65 : vector<16x128xf32> to vector<16x128xbf16>
    %c52_63 = arith.constant 52 : index
    %c0_64 = arith.constant 0 : index
    %67 = vector.load %arg7[%c52_63, %c0_64] : memref<138x128xbf16, #tpu.memory_space<vmem>>, vector<16x128xbf16>
    tpu.vector_store %arg7[%c52_63, %c0_64], %66 {strides = array<i32>} : memref<138x128xbf16, #tpu.memory_space<vmem>>, vector<16x128xbf16>,
    %68 = vector.extract_strided_slice %55 {offsets = [68, 0], sizes = [16, 128], strides = [1, 1]} : vector<136x128xf32> to vector<16x128xf32>
    %69 = arith.truncf %68 : vector<16x128xf32> to vector<16x128xbf16>
    %c69_65 = arith.constant 69 : index
    %c0_66 = arith.constant 0 : index
    %70 = vector.load %arg7[%c69_65, %c0_66] : memref<138x128xbf16, #tpu.memory_space<vmem>>, vector<16x128xbf16>
    tpu.vector_store %arg7[%c69_65, %c0_66], %69 {strides = array<i32>} : memref<138x128xbf16, #tpu.memory_space<vmem>>, vector<16x128xbf16>,
    %71 = vector.extract_strided_slice %55 {offsets = [85, 0], sizes = [16, 128], strides = [1, 1]} : vector<136x128xf32> to vector<16x128xf32>
    %72 = arith.truncf %71 : vector<16x128xf32> to vector<16x128xbf16>
    %c86_67 = arith.constant 86 : index
    %c0_68 = arith.constant 0 : index
    %73 = vector.load %arg7[%c86_67, %c0_68] : memref<138x128xbf16, #tpu.memory_space<vmem>>, vector<16x128xbf16>
    tpu.vector_store %arg7[%c86_67, %c0_68], %72 {strides = array<i32>} : memref<138x128xbf16, #tpu.memory_space<vmem>>, vector<16x128xbf16>,
    %74 = vector.extract_strided_slice %55 {offsets = [102, 0], sizes = [16, 128], strides = [1, 1]} : vector<136x128xf32> to vector<16x128xf32>
    %75 = arith.truncf %74 : vector<16x128xf32> to vector<16x128xbf16>
    %c103_69 = arith.constant 103 : index
    %c0_70 = arith.constant 0 : index
    %76 = vector.load %arg7[%c103_69, %c0_70] : memref<138x128xbf16, #tpu.memory_space<vmem>>, vector<16x128xbf16>
    tpu.vector_store %arg7[%c103_69, %c0_70], %75 {strides = array<i32>} : memref<138x128xbf16, #tpu.memory_space<vmem>>, vector<16x128xbf16>,
    %77 = vector.extract_strided_slice %55 {offsets = [119, 0], sizes = [16, 128], strides = [1, 1]} : vector<136x128xf32> to vector<16x128xf32>
    %78 = arith.truncf %77 : vector<16x128xf32> to vector<16x128xbf16>
    %c120_71 = arith.constant 120 : index
    %c0_72 = arith.constant 0 : index
    %79 = vector.load %arg7[%c120_71, %c0_72] : memref<138x128xbf16, #tpu.memory_space<vmem>>, vector<16x128xbf16>
    tpu.vector_store %arg7[%c120_71, %c0_72], %78 {strides = array<i32>} : memref<138x128xbf16, #tpu.memory_space<vmem>>, vector<16x128xbf16>,
    %c0_73 = arith.constant 0 : index
    %c0_74 = arith.constant 0 : index
    %80 = vector.load %arg7[%c0_73, %c0_74] : memref<138x128xbf16, #tpu.memory_space<vmem>>, vector<136x128xbf16>
    %c0_75 = arith.constant 0 : index
    %c0_76 = arith.constant 0 : index
    %c0_77 = arith.constant 0 : index
    %81 = vector.load %arg4[%c0_75, %c0_76, %c0_77] : memref<3x128x128xbf16, #tpu.memory_space<vmem>>, vector<1x128x128xbf16>
    %82 = vector.shape_cast %81 : vector<1x128x128xbf16> to vector<128x128xbf16>
    %cst_78 = arith.constant dense<0.000000e+00> : vector<136x128xf32>
    %83 = tpu.matmul %80, %82, %cst_78 {dimension_numbers = #tpu.dot_dimension_numbers<[1], [0], [0], [1], [0, 0, 1, 1], [], []>} : vector<136x128xbf16>, vector<128x128xbf16>, vector<136x128xf32> -> vector<136x128xf32>
    %c1_79 = arith.constant 1 : index
    %c0_80 = arith.constant 0 : index
    %84 = vector.load %arg7[%c1_79, %c0_80] : memref<138x128xbf16, #tpu.memory_space<vmem>>, vector<136x128xbf16>
    %c1_81 = arith.constant 1 : index
    %c0_82 = arith.constant 0 : index
    %c0_83 = arith.constant 0 : index
    %85 = vector.load %arg4[%c1_81, %c0_82, %c0_83] : memref<3x128x128xbf16, #tpu.memory_space<vmem>>, vector<1x128x128xbf16>
    %86 = vector.shape_cast %85 : vector<1x128x128xbf16> to vector<128x128xbf16>
    %cst_84 = arith.constant dense<0.000000e+00> : vector<136x128xf32>
    %87 = tpu.matmul %84, %86, %cst_84 {dimension_numbers = #tpu.dot_dimension_numbers<[1], [0], [0], [1], [0, 0, 1, 1], [], []>} : vector<136x128xbf16>, vector<128x128xbf16>, vector<136x128xf32> -> vector<136x128xf32>
    %88 = arith.addf %83, %87 : vector<136x128xf32>
    %c2_85 = arith.constant 2 : index
    %c0_86 = arith.constant 0 : index
    %89 = vector.load %arg7[%c2_85, %c0_86] : memref<138x128xbf16, #tpu.memory_space<vmem>>, vector<136x128xbf16>
    %c2_87 = arith.constant 2 : index
    %c0_88 = arith.constant 0 : index
    %c0_89 = arith.constant 0 : index
    %90 = vector.load %arg4[%c2_87, %c0_88, %c0_89] : memref<3x128x128xbf16, #tpu.memory_space<vmem>>, vector<1x128x128xbf16>
    %91 = vector.shape_cast %90 : vector<1x128x128xbf16> to vector<128x128xbf16>
    %cst_90 = arith.constant dense<0.000000e+00> : vector<136x128xf32>
    %92 = tpu.matmul %89, %91, %cst_90 {dimension_numbers = #tpu.dot_dimension_numbers<[1], [0], [0], [1], [0, 0, 1, 1], [], []>} : vector<136x128xbf16>, vector<128x128xbf16>, vector<136x128xf32> -> vector<136x128xf32>
    %93 = arith.addf %88, %92 : vector<136x128xf32>
    %c0_91 = arith.constant 0 : index
    %c0_92 = arith.constant 0 : index
    %94 = vector.load %arg5[%c0_91, %c0_92] : memref<1x128xf32, #tpu.memory_space<vmem>>, vector<1x128xf32>
    %95 = vector.shape_cast %94 : vector<1x128xf32> to vector<128xf32>
    %96 = vector.shape_cast %95 : vector<128xf32> to vector<1x128xf32>
    %97 = vector.broadcast %96 : vector<1x128xf32> to vector<136x128xf32>
    %98 = arith.addf %93, %97 : vector<136x128xf32>
    %99 = vector.extract_strided_slice %98 {offsets = [0, 0], sizes = [16, 128], strides = [1, 1]} : vector<136x128xf32> to vector<16x128xf32>
    %c0_93 = arith.constant 0 : index
    %c0_94 = arith.constant 0 : index
    %c0_95 = arith.constant 0 : index
    %100 = vector.load %arg1[%c0_93, %c0_94, %c0_95] : memref<8x16x128xbf16, #tpu.memory_space<vmem>>, vector<1x16x128xbf16>
    %101 = vector.shape_cast %100 : vector<1x16x128xbf16> to vector<16x128xbf16>
    %102 = arith.extf %101 : vector<16x128xbf16> to vector<16x128xf32>
    %103 = arith.addf %99, %102 : vector<16x128xf32>
    %cst_96 = arith.constant 0.000000e+00 : f32
    %104 = vector.broadcast %cst_96 : f32 to vector<16x128xf32>
    %105 = arith.maximumf %103, %104 : vector<16x128xf32>
    %106 = arith.truncf %105 : vector<16x128xf32> to vector<16x128xbf16>
    %c0_97 = arith.constant 0 : index
    %c0_98 = arith.constant 0 : index
    %c0_99 = arith.constant 0 : index
    %107 = vector.load %arg6[%c0_97, %c0_98, %c0_99] : memref<8x16x128xbf16, #tpu.memory_space<vmem>>, vector<1x16x128xbf16>
    %108 = vector.shape_cast %107 : vector<1x16x128xbf16> to vector<16x128xbf16>
    %109 = vector.shape_cast %106 : vector<16x128xbf16> to vector<1x16x128xbf16>
    tpu.vector_store %arg6[%c0_97, %c0_98, %c0_99], %109 {strides = array<i32>} : memref<8x16x128xbf16, #tpu.memory_space<vmem>>, vector<1x16x128xbf16>,
    %110 = vector.extract_strided_slice %98 {offsets = [17, 0], sizes = [16, 128], strides = [1, 1]} : vector<136x128xf32> to vector<16x128xf32>
    %c1_100 = arith.constant 1 : index
    %c0_101 = arith.constant 0 : index
    %c0_102 = arith.constant 0 : index
    %111 = vector.load %arg1[%c1_100, %c0_101, %c0_102] : memref<8x16x128xbf16, #tpu.memory_space<vmem>>, vector<1x16x128xbf16>
    %112 = vector.shape_cast %111 : vector<1x16x128xbf16> to vector<16x128xbf16>
    %113 = arith.extf %112 : vector<16x128xbf16> to vector<16x128xf32>
    %114 = arith.addf %110, %113 : vector<16x128xf32>
    %cst_103 = arith.constant 0.000000e+00 : f32
    %115 = vector.broadcast %cst_103 : f32 to vector<16x128xf32>
    %116 = arith.maximumf %114, %115 : vector<16x128xf32>
    %117 = arith.truncf %116 : vector<16x128xf32> to vector<16x128xbf16>
    %c1_104 = arith.constant 1 : index
    %c0_105 = arith.constant 0 : index
    %c0_106 = arith.constant 0 : index
    %118 = vector.load %arg6[%c1_104, %c0_105, %c0_106] : memref<8x16x128xbf16, #tpu.memory_space<vmem>>, vector<1x16x128xbf16>
    %119 = vector.shape_cast %118 : vector<1x16x128xbf16> to vector<16x128xbf16>
    %120 = vector.shape_cast %117 : vector<16x128xbf16> to vector<1x16x128xbf16>
    tpu.vector_store %arg6[%c1_104, %c0_105, %c0_106], %120 {strides = array<i32>} : memref<8x16x128xbf16, #tpu.memory_space<vmem>>, vector<1x16x128xbf16>,
    %121 = vector.extract_strided_slice %98 {offsets = [34, 0], sizes = [16, 128], strides = [1, 1]} : vector<136x128xf32> to vector<16x128xf32>
    %c2_107 = arith.constant 2 : index
    %c0_108 = arith.constant 0 : index
    %c0_109 = arith.constant 0 : index
    %122 = vector.load %arg1[%c2_107, %c0_108, %c0_109] : memref<8x16x128xbf16, #tpu.memory_space<vmem>>, vector<1x16x128xbf16>
    %123 = vector.shape_cast %122 : vector<1x16x128xbf16> to vector<16x128xbf16>
    %124 = arith.extf %123 : vector<16x128xbf16> to vector<16x128xf32>
    %125 = arith.addf %121, %124 : vector<16x128xf32>
    %cst_110 = arith.constant 0.000000e+00 : f32
    %126 = vector.broadcast %cst_110 : f32 to vector<16x128xf32>
    %127 = arith.maximumf %125, %126 : vector<16x128xf32>
    %128 = arith.truncf %127 : vector<16x128xf32> to vector<16x128xbf16>
    %c2_111 = arith.constant 2 : index
    %c0_112 = arith.constant 0 : index
    %c0_113 = arith.constant 0 : index
    %129 = vector.load %arg6[%c2_111, %c0_112, %c0_113] : memref<8x16x128xbf16, #tpu.memory_space<vmem>>, vector<1x16x128xbf16>
    %130 = vector.shape_cast %129 : vector<1x16x128xbf16> to vector<16x128xbf16>
    %131 = vector.shape_cast %128 : vector<16x128xbf16> to vector<1x16x128xbf16>
    tpu.vector_store %arg6[%c2_111, %c0_112, %c0_113], %131 {strides = array<i32>} : memref<8x16x128xbf16, #tpu.memory_space<vmem>>, vector<1x16x128xbf16>,
    %132 = vector.extract_strided_slice %98 {offsets = [51, 0], sizes = [16, 128], strides = [1, 1]} : vector<136x128xf32> to vector<16x128xf32>
    %c3_114 = arith.constant 3 : index
    %c0_115 = arith.constant 0 : index
    %c0_116 = arith.constant 0 : index
    %133 = vector.load %arg1[%c3_114, %c0_115, %c0_116] : memref<8x16x128xbf16, #tpu.memory_space<vmem>>, vector<1x16x128xbf16>
    %134 = vector.shape_cast %133 : vector<1x16x128xbf16> to vector<16x128xbf16>
    %135 = arith.extf %134 : vector<16x128xbf16> to vector<16x128xf32>
    %136 = arith.addf %132, %135 : vector<16x128xf32>
    %cst_117 = arith.constant 0.000000e+00 : f32
    %137 = vector.broadcast %cst_117 : f32 to vector<16x128xf32>
    %138 = arith.maximumf %136, %137 : vector<16x128xf32>
    %139 = arith.truncf %138 : vector<16x128xf32> to vector<16x128xbf16>
    %c3_118 = arith.constant 3 : index
    %c0_119 = arith.constant 0 : index
    %c0_120 = arith.constant 0 : index
    %140 = vector.load %arg6[%c3_118, %c0_119, %c0_120] : memref<8x16x128xbf16, #tpu.memory_space<vmem>>, vector<1x16x128xbf16>
    %141 = vector.shape_cast %140 : vector<1x16x128xbf16> to vector<16x128xbf16>
    %142 = vector.shape_cast %139 : vector<16x128xbf16> to vector<1x16x128xbf16>
    tpu.vector_store %arg6[%c3_118, %c0_119, %c0_120], %142 {strides = array<i32>} : memref<8x16x128xbf16, #tpu.memory_space<vmem>>, vector<1x16x128xbf16>,
    %143 = vector.extract_strided_slice %98 {offsets = [68, 0], sizes = [16, 128], strides = [1, 1]} : vector<136x128xf32> to vector<16x128xf32>
    %c4_121 = arith.constant 4 : index
    %c0_122 = arith.constant 0 : index
    %c0_123 = arith.constant 0 : index
    %144 = vector.load %arg1[%c4_121, %c0_122, %c0_123] : memref<8x16x128xbf16, #tpu.memory_space<vmem>>, vector<1x16x128xbf16>
    %145 = vector.shape_cast %144 : vector<1x16x128xbf16> to vector<16x128xbf16>
    %146 = arith.extf %145 : vector<16x128xbf16> to vector<16x128xf32>
    %147 = arith.addf %143, %146 : vector<16x128xf32>
    %cst_124 = arith.constant 0.000000e+00 : f32
    %148 = vector.broadcast %cst_124 : f32 to vector<16x128xf32>
    %149 = arith.maximumf %147, %148 : vector<16x128xf32>
    %150 = arith.truncf %149 : vector<16x128xf32> to vector<16x128xbf16>
    %c4_125 = arith.constant 4 : index
    %c0_126 = arith.constant 0 : index
    %c0_127 = arith.constant 0 : index
    %151 = vector.load %arg6[%c4_125, %c0_126, %c0_127] : memref<8x16x128xbf16, #tpu.memory_space<vmem>>, vector<1x16x128xbf16>
    %152 = vector.shape_cast %151 : vector<1x16x128xbf16> to vector<16x128xbf16>
    %153 = vector.shape_cast %150 : vector<16x128xbf16> to vector<1x16x128xbf16>
    tpu.vector_store %arg6[%c4_125, %c0_126, %c0_127], %153 {strides = array<i32>} : memref<8x16x128xbf16, #tpu.memory_space<vmem>>, vector<1x16x128xbf16>,
    %154 = vector.extract_strided_slice %98 {offsets = [85, 0], sizes = [16, 128], strides = [1, 1]} : vector<136x128xf32> to vector<16x128xf32>
    %c5_128 = arith.constant 5 : index
    %c0_129 = arith.constant 0 : index
    %c0_130 = arith.constant 0 : index
    %155 = vector.load %arg1[%c5_128, %c0_129, %c0_130] : memref<8x16x128xbf16, #tpu.memory_space<vmem>>, vector<1x16x128xbf16>
    %156 = vector.shape_cast %155 : vector<1x16x128xbf16> to vector<16x128xbf16>
    %157 = arith.extf %156 : vector<16x128xbf16> to vector<16x128xf32>
    %158 = arith.addf %154, %157 : vector<16x128xf32>
    %cst_131 = arith.constant 0.000000e+00 : f32
    %159 = vector.broadcast %cst_131 : f32 to vector<16x128xf32>
    %160 = arith.maximumf %158, %159 : vector<16x128xf32>
    %161 = arith.truncf %160 : vector<16x128xf32> to vector<16x128xbf16>
    %c5_132 = arith.constant 5 : index
    %c0_133 = arith.constant 0 : index
    %c0_134 = arith.constant 0 : index
    %162 = vector.load %arg6[%c5_132, %c0_133, %c0_134] : memref<8x16x128xbf16, #tpu.memory_space<vmem>>, vector<1x16x128xbf16>
    %163 = vector.shape_cast %162 : vector<1x16x128xbf16> to vector<16x128xbf16>
    %164 = vector.shape_cast %161 : vector<16x128xbf16> to vector<1x16x128xbf16>
    tpu.vector_store %arg6[%c5_132, %c0_133, %c0_134], %164 {strides = array<i32>} : memref<8x16x128xbf16, #tpu.memory_space<vmem>>, vector<1x16x128xbf16>,
    %165 = vector.extract_strided_slice %98 {offsets = [102, 0], sizes = [16, 128], strides = [1, 1]} : vector<136x128xf32> to vector<16x128xf32>
    %c6_135 = arith.constant 6 : index
    %c0_136 = arith.constant 0 : index
    %c0_137 = arith.constant 0 : index
    %166 = vector.load %arg1[%c6_135, %c0_136, %c0_137] : memref<8x16x128xbf16, #tpu.memory_space<vmem>>, vector<1x16x128xbf16>
    %167 = vector.shape_cast %166 : vector<1x16x128xbf16> to vector<16x128xbf16>
    %168 = arith.extf %167 : vector<16x128xbf16> to vector<16x128xf32>
    %169 = arith.addf %165, %168 : vector<16x128xf32>
    %cst_138 = arith.constant 0.000000e+00 : f32
    %170 = vector.broadcast %cst_138 : f32 to vector<16x128xf32>
    %171 = arith.maximumf %169, %170 : vector<16x128xf32>
    %172 = arith.truncf %171 : vector<16x128xf32> to vector<16x128xbf16>
    %c6_139 = arith.constant 6 : index
    %c0_140 = arith.constant 0 : index
    %c0_141 = arith.constant 0 : index
    %173 = vector.load %arg6[%c6_139, %c0_140, %c0_141] : memref<8x16x128xbf16, #tpu.memory_space<vmem>>, vector<1x16x128xbf16>
    %174 = vector.shape_cast %173 : vector<1x16x128xbf16> to vector<16x128xbf16>
    %175 = vector.shape_cast %172 : vector<16x128xbf16> to vector<1x16x128xbf16>
    tpu.vector_store %arg6[%c6_139, %c0_140, %c0_141], %175 {strides = array<i32>} : memref<8x16x128xbf16, #tpu.memory_space<vmem>>, vector<1x16x128xbf16>,
    %176 = vector.extract_strided_slice %98 {offsets = [119, 0], sizes = [16, 128], strides = [1, 1]} : vector<136x128xf32> to vector<16x128xf32>
    %c7_142 = arith.constant 7 : index
    %c0_143 = arith.constant 0 : index
    %c0_144 = arith.constant 0 : index
    %177 = vector.load %arg1[%c7_142, %c0_143, %c0_144] : memref<8x16x128xbf16, #tpu.memory_space<vmem>>, vector<1x16x128xbf16>
    %178 = vector.shape_cast %177 : vector<1x16x128xbf16> to vector<16x128xbf16>
    %179 = arith.extf %178 : vector<16x128xbf16> to vector<16x128xf32>
    %180 = arith.addf %176, %179 : vector<16x128xf32>
    %cst_145 = arith.constant 0.000000e+00 : f32
    %181 = vector.broadcast %cst_145 : f32 to vector<16x128xf32>
    %182 = arith.maximumf %180, %181 : vector<16x128xf32>
    %183 = arith.truncf %182 : vector<16x128xf32> to vector<16x128xbf16>
    %c7_146 = arith.constant 7 : index
    %c0_147 = arith.constant 0 : index
    %c0_148 = arith.constant 0 : index
    %184 = vector.load %arg6[%c7_146, %c0_147, %c0_148] : memref<8x16x128xbf16, #tpu.memory_space<vmem>>, vector<1x16x128xbf16>
    %185 = vector.shape_cast %184 : vector<1x16x128xbf16> to vector<16x128xbf16>
    %186 = vector.shape_cast %183 : vector<16x128xbf16> to vector<1x16x128xbf16>
    tpu.vector_store %arg6[%c7_146, %c0_147, %c0_148], %186 {strides = array<i32>} : memref<8x16x128xbf16, #tpu.memory_space<vmem>>, vector<1x16x128xbf16>,
    return
  }
  func.func @transform_0(%arg0: i32) -> (i32, i32, i32) {
    %c0_i32 = arith.constant 0 : i32
    %c0_i32_0 = arith.constant 0 : i32
    %c0_i32_1 = arith.constant 0 : i32
    return %arg0, %c0_i32, %c0_i32_0 : i32, i32, i32
  }
  func.func @transform_1(%arg0: i32) -> (i32, i32, i32) {
    %c0_i32 = arith.constant 0 : i32
    %c0_i32_0 = arith.constant 0 : i32
    %c0_i32_1 = arith.constant 0 : i32
    %c0_i32_2 = arith.constant 0 : i32
    return %c0_i32, %c0_i32_0, %c0_i32_1 : i32, i32, i32
  }
  func.func @transform_2(%arg0: i32) -> (i32, i32) {
    %c0_i32 = arith.constant 0 : i32
    %c0_i32_0 = arith.constant 0 : i32
    %c0_i32_1 = arith.constant 0 : i32
    return %c0_i32, %c0_i32_0 : i32, i32
  }
  func.func @transform_3(%arg0: i32) -> (i32, i32, i32) {
    %c0_i32 = arith.constant 0 : i32
    %c0_i32_0 = arith.constant 0 : i32
    %c0_i32_1 = arith.constant 0 : i32
    %c0_i32_2 = arith.constant 0 : i32
    return %c0_i32, %c0_i32_0, %c0_i32_1 : i32, i32, i32
  }
  func.func @transform_4(%arg0: i32) -> (i32, i32) {
    %c0_i32 = arith.constant 0 : i32
    %c0_i32_0 = arith.constant 0 : i32
    %c0_i32_1 = arith.constant 0 : i32
    return %c0_i32, %c0_i32_0 : i32, i32
  }
  func.func @transform_5(%arg0: i32) -> (i32, i32, i32) {
    %c0_i32 = arith.constant 0 : i32
    %c0_i32_0 = arith.constant 0 : i32
    %c0_i32_1 = arith.constant 0 : i32
    return %arg0, %c0_i32, %c0_i32_0 : i32, i32, i32
  }
}

</mosaic_0001>

<bundles_post_ra>
// kernel: residual_forward.1
= control target key start
LH: loop header
LB: loop body
LE: loop exit
PB: predicated region body
PF: predicated region fallthrough
CT: control target
= control target key end

     0   :  { %s3591_s18 = smov 0   ;;  %s4482_s0 = inlined_call_operand.vmem [shape: bf16[16,16,128], index: 0, kind: input, shape index: {}]   ;;  %s4483_s1 = inlined_call_operand.vmem [shape: bf16[3,128,128], index: 1, kind: input, shape index: {}]   ;;  %s4484_s2 = inlined_call_operand.vmem [shape: f32[1,128], index: 2, kind: input, shape index: {}]   ;;  %s4485_s3 = inlined_call_operand.vmem [shape: bf16[3,128,128], index: 3, kind: input, shape index: {}]   ;;  %s4486_s4 = inlined_call_operand.vmem [shape: f32[1,128], index: 4, kind: input, shape index: {}]   ;;  %s4487_s5 = inlined_call_operand.vmem [shape: bf16[16,16,128], index: 5, kind: output, shape index: {}]  }
   0x1 LB: > { %s2720_s19 = sadd.s32 4294967295, %s3556_s18   ;;  %p2724_p0 = scmp.ge.s32.totalorder %s3556_s18, 1  ;;  %s3556_s18 = sphi %s3591_s18, %s15_s18  }
   0x2   : > { %p189_p1 = scmp.lt.s32.totalorder %s3556_s18, 3 }
   0x4   : > { %p190_p2 = pnand %p2724_p0, %p189_p1 }
   0x5   : > { %v3480_v0 = vld [vmem:[%s4483_s1 + $0x40] sm:$0xff] (!%p190_p2)   ;;  %v3558_v1 = vmov (!%p190_p2), 0.0   ;;  %v3482_v3 = vld [vmem:[%s4483_s1 + $0x48] sm:$0xff] (!%p190_p2)   ;;  %vm4490_vm0 = vmmov (!%p190_p2), 0   ;;  %s2725_s26 = sshll.u32 (!%p190_p2), %s2720_s19, 3  ;;  %v3484_v5 = vld [vmem:[%s4483_s1 + $0x50] sm:$0xff] (!%p190_p2)  }
   0x6   : > { %193 = sbr.rel (%p190_p2) target bundleno = 732 (0x2dc), region = 40  ;;  %3157 = vmatprep.subr.bf16.mxu0 (!%p190_p2), %v3558_v1  ;;  %3209 = vmatprep.subr.bf16.mxu1 (!%p190_p2), %v3558_v1  ;;  %v3481_v2 = vld [vmem:[%s4483_s1] sm:$0xff] (!%p190_p2)   ;;  %v3483_v4 = vld [vmem:[%s4483_s1 + $0x8] sm:$0xff] (!%p190_p2)   ;;  %p220_p3 = scmp.lt.s32.totalorder (!%p190_p2), %s2725_s26, 15  ;;  %v3485_v6 = vld [vmem:[%s4483_s1 + $0x10] sm:$0xff] (!%p190_p2)   ;;  %vm4488_vm1 = vcmask (!%p190_p2), 1040384  }
   0x7   : > { %3158 = vmatpush3.bf16.msra.mxu0 (!%p190_p2), %v3480_v0  ;;  %3173 = vmatprep.mubr.msk.bf16.mxu0 (!%p190_p2), %vm4490_vm0, %v3558_v1  ;;  %v3486_v7 = vld [vmem:[%s4483_s1 + $0x58] sm:$0xff] (!%p190_p2)   ;;  %vm4489_vm2 = vcmask (!%p190_p2), 1043456   ;;  %v3488_v9 = vld [vmem:[%s4483_s1 + $0x60] sm:$0xff] (!%p190_p2)   ;;  %vm317_vm3 = vcmask (!%p190_p2), 1044484   ;;  %vm245_vm4 = vcmask (!%p190_p2), 1041409   ;;  %v3490_v11 = vld [vmem:[%s4483_s1 + $0x68] sm:$0xff] (!%p190_p2)  }
   0x8   : > { %3210 = vmatpush3.bf16.msra.mxu1 (!%p190_p2), %v3481_v2  ;;  %3159 = vmatprep.subr.bf16.mxu0 (!%p190_p2), %v3558_v1  ;;  %v3487_v8 = vld [vmem:[%s4483_s1 + $0x18] sm:$0xff] (!%p190_p2)   ;;  %v3489_v10 = vld [vmem:[%s4483_s1 + $0x20] sm:$0xff] (!%p190_p2)   ;;  %vm235_vm5 = vsmask.f32 (!%p190_p2), 256  ;;  %vm240_vm6 = vsmask.f32 (!%p190_p2), 7938  ;;  %vm3683_vm13 = vmor (!%p190_p2), %vm4488_vm1, %vm317_vm3 }
   0x9   : > { %3211 = vmatprep.subr.bf16.mxu1 (!%p190_p2), %v3558_v1  ;;  %3225 = vmatprep.mubr.msk.bf16.mxu1 (!%p190_p2), %vm4490_vm0, %v3558_v1  ;;  %v237_v12 = vld [vmem:[#allocation2] sm:$0x1] (!%p190_p2)  ;;  %vm3658_vm7 = vmand (!%p190_p2), %vm4488_vm1, %vm235_vm5  ;;  %v242_v14 = vld [vmem:[#allocation2 + $0x8] sm:$0x1] (!%p190_p2)  ;;  %vm281_vm8 = vsmask.f32 (!%p190_p2), 4368 }
   0xa   : > { %v3491_v16 = vld [vmem:[%s4483_s1 + $0x28] sm:$0xff] (!%p190_p2)   ;;  %v238_v17 = vsel (!%p190_p2), %vm3658_vm7, 0, %v237_v12  ;;  %vm241_vm9 = vmand (!%p190_p2), %vm4488_vm1, %vm240_vm6  ;;  %vm357_vm10 = vcmask (!%p190_p2), 1043457   ;;  %vm4493_vm11 = vcmask (!%p190_p2), 1041408   ;;  %v3492_v25 = vld [vmem:[%s4483_s1 + $0x70] sm:$0xff] (!%p190_p2)   ;;  %vm373_vm12 = vcmask (!%p190_p2), 1045508  }
   0xb   : > { %3160 = vmatpush3.bf16.msra.mxu0 (!%p190_p2), %v3482_v3  ;;  %239 = vst [vmem:[#allocation2] sm:$0x1] (!%p190_p2), %v238_v17  ;;  %v243_v21 = vsel (!%p190_p2), %vm241_vm9, 0, %v242_v14  ;;  %v3493_v29 = vld [vmem:[%s4483_s1 + $0x30] sm:$0xff] (!%p190_p2)   ;;  %v4503_v31 = vmov (!%p190_p2), 0  ;;  %vm3689_vm14 = vmor (!%p190_p2), %vm235_vm5, %vm281_vm8  ;;  %v3494_v47 = vld [vmem:[%s4483_s1 + $0x78] sm:$0xff] (!%p190_p2)  }
   0xc   : > { %3212 = vmatpush3.bf16.msra.mxu1 (!%p190_p2), %v3483_v4  ;;  %3161 = vmatprep.subr.bf16.mxu0 (!%p190_p2), %v3558_v1  ;;  %244 = vst [vmem:[#allocation2 + $0x8] sm:$0x1] (!%p190_p2), %v243_v21  ;;  %v4504_v31 = vsel (!%p190_p2), %vm3683_vm13, 4294967295, %v4503_v31  ;;  %vm246_vm15 = vsmask.f32 (!%p190_p2), 1280  ;;  %vm3700_vm5 = vmand (!%p190_p2), %vm4489_vm2, %vm240_vm6  ;;  %v3495_v55 = vld [vmem:[%s4483_s1 + $0x38] sm:$0xff] (!%p190_p2)  }
   0xd   : > { %s4568_s26 = smov (!%p220_p3, %s2725_s26), 15  ;;  %3213 = vmatprep.subr.bf16.mxu1 %v3558_v1  ;;  %v248_v37 = vld [vmem:[#allocation2 + $0x10] sm:$0x2]  ;;  %vm247_vm3 = vmand %vm245_vm4, %vm246_vm15  ;;  %vm251_vm9 = vsmask.f32 7942  ;;  %v4511_v61 = vmov 0 }
   0xe   : > { %s2963_s12 = sshll.u32 %s4568_s26, 3  ;;  %v249_v44 = vsel %vm247_vm3, 0, %v248_v37  ;;  %vm333_vm8 = vsmask.f32 5392  ;;  %vm3714_vm6 = vmand %vm245_vm4, %vm251_vm9  ;;  %vm256_vm3 = vcmask 1042434   ;;  %vm4496_vm1 = vcmask 1042432  }
   0xf   : > { %3162 = vmatpush3.bf16.msra.mxu0 %v3484_v5  ;;  %s3646_s17 = scalar_lea.vmem %s4482_s0, %s2963_s12  ;;  %250 = vst [vmem:[#allocation2 + $0x10] sm:$0x2] %v249_v44  ;;  %vm3726_vm4 = vmor %vm4493_vm11, %vm373_vm12  ;;  %v253_v63 = vld [vmem:[#allocation2 + $0x18] sm:$0x2]  ;;  %vm4492_vm0 = vsmask.f32 2304  ;;  %s4377_s19 = scalar_lea.vmem %s4487_s5, %s2963_s12 }
  0x10   : > { %3214 = vmatpush3.bf16.msra.mxu1 %v3485_v6  ;;  %3163 = vmatprep.subr.bf16.mxu0 %v3558_v1  ;;  %v279_v15 = vld [vmem:[%s3646_s17] sm:$0xf]  ;;  %v280_v18 = vld [vmem:[%s3646_s17 + $0x4] sm:$0xf]  ;;  %v2731_v24 = vld [vmem:[%s3646_s17 + $0x8] sm:$0xf] }
  0x11   : > { %3215 = vmatprep.subr.bf16.mxu1 %v3558_v1  ;;  %v284_v19 = vshrl.u32 %v279_v15, 16  ;;  %v287_v20 = vshll.u32 %v279_v15, 16  ;;  %v292_v22 = vshrl.u32 %v280_v18, 16  ;;  %v295_v23 = vshll.u32 %v280_v18, 16  ;;  %v2732_v27 = vld [vmem:[%s3646_s17 + $0xc] sm:$0xf]  ;;  %vm3739_vm12 = vmand %vm357_vm10, %vm251_vm9 }
  0x12   : > { %v319_v28 = vrot.slane %v2731_v24, 7  ;;  %v321_v32 = vrot.slane %v2732_v27, 7  ;;  %v2733_v41 = vld [vmem:[%s3646_s17 + $0x10] sm:$0xf]  ;;  %v2734_v45 = vld [vmem:[%s3646_s17 + $0x14] sm:$0xf]  ;;  %vm3747_vm2 = vmor %vm246_vm15, %vm333_vm8 }
  0x13   : > { %3164 = vmatpush3.bf16.msra.mxu0 %v3486_v7  ;;  %v286_v26 = vrot.slane %v284_v19, 7  ;;  %v294_v30 = vrot.slane %v292_v22, 7  ;;  %v336_v46 = vshrl.u32 %v2733_v41, 16  ;;  %v339_v49 = vshll.u32 %v2733_v41, 16  ;;  %v305_v52 = vld [vmem:[#allocation2] sm:$0xf]  ;;  %vm258_vm10 = vmand %vm256_vm3, %vm4492_vm0 }
  0x14   : > { %3216 = vmatpush3.bf16.msra.mxu1 %v3487_v8  ;;  %3165 = vmatprep.subr.bf16.mxu0 %v3558_v1  ;;  %v320_v36 = vrot.slane %v319_v28, 4  ;;  %327 = vst [vmem:[#allocation2 + $0x8] sm:$0xe] %v319_v28  ;;  %v323_v40 = vrot.slane %v321_v32, 4  ;;  %v345_v50 = vshrl.u32 %v2734_v45, 16  ;;  %v348_v51 = vshll.u32 %v2734_v45, 16 }
  0x15   : > { %3217 = vmatprep.subr.bf16.mxu1 %v3558_v1  ;;  %v289_v34 = vor.u32 %v287_v20, %v286_v26  ;;  %v290_v35 = vrot.slane %v286_v26, 4  ;;  %v297_v38 = vor.u32 %v295_v23, %v294_v30  ;;  %v299_v39 = vrot.slane %v294_v30, 4  ;;  %v309_v57 = vld [vmem:[#allocation2 + $0x8] sm:$0x1]  ;;  %v2735_v0 = vld [vmem:[%s3646_s17 + $0x18] sm:$0xf] }
  0x16   : > { %v322_v43 = vsel %vm3683_vm13, %v320_v36, %v321_v32  ;;  %329 = vst [vmem:[#allocation2 + $0x10] sm:$0x1] %v323_v40  ;;  %v338_v53 = vrot.slane %v336_v46, 6  ;;  %v341_v58 = vrot.slane %v339_v49, 7  ;;  %v347_v59 = vrot.slane %v345_v50, 6  ;;  %v2743_v26 = vld [vmem:[%s3646_s17 + $0x38] sm:$0xff]  }
  0x17   : > { %3166 = vmatpush3.bf16.msra.mxu0 %v3488_v9  ;;  %v298_v48 = vsel %vm3689_vm14, %v290_v35, %v297_v38  ;;  %328 = vst [vmem:[#allocation2 + $0xc] sm:$0xf] %v322_v43  ;;  %v306_v56 = vsel %vm3700_vm5, %v289_v34, %v305_v52  ;;  %v350_v60 = vrot.slane %v348_v51, 7  ;;  %v4512_v61 = vsel %vm3726_vm4, 4294967295, %v4511_v61  ;;  %v2736_v2 = vld [vmem:[%s3646_s17 + $0x1c] sm:$0xf] }
  0x18   : > { %3218 = vmatpush3.bf16.msra.mxu1 %v3489_v10  ;;  %3167 = vmatprep.subr.bf16.mxu0 %v3558_v1  ;;  %308 = vst [vmem:[#allocation2 + $0x4] sm:$0xf] %v298_v48  ;;  %307 = vst [vmem:[#allocation2] sm:$0xf] %v306_v56  ;;  %v310_v62 = vsel %vm3658_vm7, %v299_v39, %v309_v57  ;;  %v342_v3 = vor.u32 %v341_v58, %v338_v53  ;;  %v254_v6 = vsel %vm3714_vm6, 0, %v253_v63  ;;  %v4515_v8 = vmov 0 }
  0x19   : > { %3219 = vmatprep.subr.bf16.mxu1 %v3558_v1  ;;  %311 = vst [vmem:[#allocation2 + $0x8] sm:$0x1] %v310_v62  ;;  %v3735_v4 = vor.u32 %v350_v60, %v347_v59  ;;  %v375_v7 = vrot.slane %v2735_v0, 6  ;;  %v4516_v8 = vsel %vm3747_vm2, 4294967295, %v4515_v8  ;;  %255 = vst [vmem:[#allocation2 + $0x18] sm:$0x2] %v254_v6 }
  0x1a   : > { %v377_v9 = vrot.slane %v2736_v2, 6  ;;  %v259_v10 = vld [vmem:[#allocation2 + $0x20] sm:$0x4]  ;;  %vm262_vm9 = vsmask.f32 7946  ;;  %vm429_vm8 = vcmask 1046532   ;;  %vm3770_vm6 = vmand %vm4493_vm11, %vm246_vm15 }
  0x1b   : > { %3168 = vmatpush3.bf16.msra.mxu0 %v3490_v11  ;;  %v343_v11 = vrot.slane %v342_v3, 4  ;;  %v376_v12 = vrot.slane %v375_v7, 4  ;;  %383 = vst [vmem:[#allocation2 + $0x18] sm:$0xc] %v375_v7  ;;  %v359_v14 = vld [vmem:[#allocation2 + $0x10] sm:$0xe]  ;;  %vm3779_vm0 = vmand %vm256_vm3, %vm262_vm9 }
  0x1c   : > { %3220 = vmatpush3.bf16.msra.mxu1 %v3491_v16  ;;  %3169 = vmatprep.subr.bf16.mxu0 %v3558_v1  ;;  %v260_v15 = vsel %vm258_vm10, 0, %v259_v10  ;;  %v379_v16 = vrot.slane %v377_v9, 4  ;;  %v360_v19 = vsel %vm3739_vm12, %v342_v3, %v359_v14  ;;  %v2737_v21 = vld [vmem:[%s3646_s17 + $0x20] sm:$0xf]  ;;  %v2738_v22 = vld [vmem:[%s3646_s17 + $0x24] sm:$0xf] }
  0x1d   : > { %3221 = vmatprep.subr.bf16.mxu1 %v3558_v1  ;;  %v352_v18 = vsel %vm3747_vm2, %v343_v11, %v3735_v4  ;;  %v378_v20 = vsel %vm3726_vm4, %v376_v12, %v377_v9  ;;  %261 = vst [vmem:[#allocation2 + $0x20] sm:$0x4] %v260_v15  ;;  %361 = vst [vmem:[#allocation2 + $0x10] sm:$0xe] %v360_v19  ;;  %v392_v23 = vshrl.u32 %v2737_v21, 16  ;;  %v395_v24 = vshll.u32 %v2737_v21, 16 }
  0x1e   : > { %362 = vst [vmem:[#allocation2 + $0x14] sm:$0xf] %v352_v18  ;;  %384 = vst [vmem:[#allocation2 + $0x1c] sm:$0xf] %v378_v20  ;;  %v353_v28 = vrot.slane %v3735_v4, 4  ;;  %v404_v30 = vshll.u32 %v2738_v22, 16 }
  0x1f   : > { %3170 = vmatpush3.bf16.msra.mxu0 %v3492_v25  ;;  %v3755_v17 = vld [vmem:[#allocation2 + $0x4] sm:$0xf]  ;;  %385 = vst [vmem:[#allocation2 + $0x20] sm:$0x3] %v379_v16  ;;  %v401_v25 = vshrl.u32 %v2738_v22, 16  ;;  %480 = vst [vmem:[#allocation2 + $0x3c] sm:$0xff] %v2743_v26  }
  0x20   : > { %3222 = vmatpush3.bf16.msra.mxu1 %v3493_v29  ;;  %3171 = vmatprep.subr.bf16.mxu0 %v3558_v1  ;;  %v482_v27 = vld [vmem:[#allocation2] sm:$0xf]  ;;  %v3775_v34 = vld [vmem:[#allocation2 + $0x8] sm:$0xff]   ;;  %v394_v35 = vrot.slane %v392_v23, 5  ;;  %v397_v36 = vrot.slane %v395_v24, 6  ;;  %v406_v40 = vrot.slane %v404_v30, 6 }
  0x21   : > { %3223 = vmatprep.subr.bf16.mxu1 %v3558_v1  ;;  %v2761_v32 = vcombine.low %v482_v27, %v3755_v17  ;;  %v403_v37 = vrot.slane %v401_v25, 5  ;;  %v365_v39 = vld [vmem:[#allocation2 + $0x18] sm:$0x3]  ;;  %v587_v44 = vshll.u32 %v3775_v34, 16  ;;  %v591_v45 = vshrl.u32 %v3775_v34, 16  ;;  %v3498_v3 = vld [vmem:[%s4483_s1 + $0x80] sm:$0xff]  }
  0x22   : > { %vm4521_vm11 = vcmask 1043458   ;;  %vm4524_vm3 = vmmov 0   ;;  %v366_v48 = vsel %vm3770_vm6, %v353_v28, %v365_v39  ;;  %v398_v49 = vor.u32 %v397_v36, %v394_v35  ;;  %v2739_v52 = vld [vmem:[%s3646_s17 + $0x28] sm:$0xf]  ;;  %v2740_v53 = vld [vmem:[%s3646_s17 + $0x2c] sm:$0xf] }
  0x23   : > { %3172 = vmatpush3.bf16.msra.mxu0 %v3494_v47  ;;  %v580_v41 = vshrl.u32 %v2761_v32, 16  ;;  %v582_v43 = vshll.u32 %v2761_v32, 16  ;;  %vm3787_vm10 = vmand %vm4521_vm11, %vm262_vm9  ;;  %v264_v47 = vld [vmem:[#allocation2 + $0x28] sm:$0x4]  ;;  %v407_v50 = vor.u32 %v406_v40, %v403_v37  ;;  %v589_v56 = vrot.slane %v587_v44, 1  ;;  %v3502_v35 = vld [vmem:[%s4483_s1 + $0x90] sm:$0xff]  }
  0x24   : > { %3224 = vmatpush3.bf16.msra.mxu1 %v3495_v55  ;;  %3261 = vmatprep.subr.bf16.mxu0 %v3558_v1  ;;  %v265_v51 = vsel %vm3779_vm0, 0, %v264_v47  ;;  %vm3801_vm11 = vmor %vm4496_vm1, %vm429_vm8  ;;  %367 = vst [vmem:[#allocation2 + $0x18] sm:$0x3] %v366_v48  ;;  %vm4527_vm9 = vsmask.f32 6416  ;;  %v431_v59 = vrot.slane %v2739_v52, 5 }
  0x25   : > { %3313 = vmatprep.subr.bf16.mxu1 %v3558_v1  ;;  %v584_v55 = vrot.slane %v582_v43, 1  ;;  %vm4528_vm15 = vsmask.f32 2304  ;;  %v415_v58 = vld [vmem:[#allocation2 + $0x20] sm:$0xc]  ;;  %v433_v60 = vrot.slane %v2740_v53, 5  ;;  %v593_v16 = vor.u32 %v591_v45, %v589_v56 }
  0x26   : > { %vm3807_vm13 = vmor %vm4528_vm15, %vm4527_vm9  ;;  %266 = vst [vmem:[#allocation2 + $0x28] sm:$0x4] %v265_v51  ;;  %v3811_v62 = vld [vmem:[#allocation2 + $0x10] sm:$0xff]   ;;  %v399_v63 = vrot.slane %v398_v49, 4  ;;  %v416_v0 = vsel %vm3787_vm10, %v398_v49, %v415_v58  ;;  %v432_v4 = vrot.slane %v431_v59, 4  ;;  %v409_v9 = vrot.slane %v407_v50, 4 }
  0x27   : > { %3226 = vmatmul.mubr.bf16.vlgmr.msra.gmra.mrb[0].mxu1 %v2761_v32  ;;  %v585_v2 = vor.u32 %v584_v55, %v580_v41  ;;  %417 = vst [vmem:[#allocation2 + $0x20] sm:$0xc] %v416_v0  ;;  %439 = vst [vmem:[#allocation2 + $0x28] sm:$0x8] %v431_v59  ;;  %v595_v6 = vshll.u32 %v3811_v62, 16  ;;  %vm4532_vm15 = vcmask 1043459  }
  0x28   : > { %3229 = vmatprep.mubr.msk.bf16.mxu1 %vm4524_vm3, %v3558_v1  ;;  %v408_v7 = vsel %vm3807_vm13, %v399_v63, %v407_v50  ;;  %vm268_vm0 = vsmask.f32 3328  ;;  %vm4531_vm8 = vsmask.f32 7424  ;;  %v434_v11 = vsel %vm3801_vm11, %v432_v4, %v433_v60  ;;  %v270_v14 = vld [vmem:[#allocation2 + $0x30] sm:$0x8] }
  0x29   : > { %v590_v10 = vsel %vm4531_vm8, %v585_v2, %v589_v56  ;;  %418 = vst [vmem:[#allocation2 + $0x24] sm:$0xf] %v408_v7  ;;  %vm3826_vm9 = vmand %vm4532_vm15, %vm268_vm0  ;;  %vm273_vm1 = vsmask.f32 7950  ;;  %v435_v15 = vrot.slane %v433_v60, 4  ;;  %v599_v18 = vshrl.u32 %v3811_v62, 16 }
  0x2a   : > { %3174 = vmatmul.mubr.bf16.vlgmr.msra.gmra.mrb[0].mxu0 %v590_v10  ;;  %vm4535_vm2 = vsmask.f32 2304  ;;  %vm4536_vm4 = vcmask 1042432   ;;  %440 = vst [vmem:[#allocation2 + $0x2c] sm:$0xf] %v434_v11  ;;  %v271_v20 = vsel %vm3826_vm9, 0, %v270_v14 }
  0x2b   : > { %vm3833_vm8 = vmand %vm4536_vm4, %vm4535_vm2  ;;  %v2741_v21 = vld [vmem:[%s3646_s17 + $0x30] sm:$0xf]  ;;  %v2742_v22 = vld [vmem:[%s3646_s17 + $0x34] sm:$0xf]  ;;  %3262 = vmatpush3.bf16.msra.mxu0 %v3498_v3  ;;  %3177 = vmatprep.mubr.msk.bf16.mxu0 %vm4524_vm3, %v3558_v1  ;;  %v597_v23 = vrot.slane %v595_v6, 1  ;;  %v3560_v48 = vmov 0  }
  0x2c   : > { %v3500_v24 = vld [vmem:[%s4483_s1 + $0x88] sm:$0xff]   ;;  %272 = vst [vmem:[#allocation2 + $0x30] sm:$0x8] %v271_v20  ;;  %441 = vst [vmem:[#allocation2 + $0x30] sm:$0x7] %v435_v15  ;;  %v448_v25 = vshll.u32 %v2741_v21, 16  ;;  %3263 = vmatprep.subr.bf16.mxu0 %v3558_v1 }
  0x2d   : > { %v451_v26 = vshrl.u32 %v2741_v21, 16  ;;  %v457_v27 = vshll.u32 %v2742_v22, 16  ;;  %v3848_v28 = vld [vmem:[#allocation2 + $0x18] sm:$0xff]   ;;  %v421_v30 = vld [vmem:[#allocation2 + $0x28] sm:$0x7]  ;;  %v461_v32 = vshrl.u32 %v2742_v22, 16  ;;  %vm4539_vm2 = vmmov %vm4532_vm15  ;;  %v601_v55 = vor.u32 %v599_v18, %v597_v23 }
  0x2e   : > { %v422_v36 = vsel %vm3833_vm8, %v409_v9, %v421_v30  ;;  %vm3859_vm4 = vmand %vm4539_vm2, %vm273_vm1  ;;  %vm445_vm15 = vsmask.f32 7440  ;;  %v450_v38 = vrot.slane %v448_v25, 5  ;;  %v603_v40 = vshll.u32 %v3848_v28, 16  ;;  %v275_v47 = vld [vmem:[#allocation2 + $0x38] sm:$0x8] }
  0x2f   : > { %3230 = vmatmul.mubr.bf16.gmra.mrb[4].mxu1 %v3775_v34  ;;  %v453_v39 = vrot.slane %v451_v26, 4  ;;  %423 = vst [vmem:[#allocation2 + $0x28] sm:$0x7] %v422_v36  ;;  %v459_v41 = vrot.slane %v457_v27, 5  ;;  %v463_v43 = vrot.slane %v461_v32, 4  ;;  %3264 = vmatpush3.bf16.msra.mxu0 %v3500_v24  ;;  %vm3867_vm1 = vmor %vm268_vm0, %vm445_vm15  ;;  %v276_v50 = vsel %vm3859_vm4, 0, %v275_v47 }
  0x30   : > { %3233 = vmatprep.mubr.msk.bf16.mxu1 %vm4524_vm3, %v3558_v1  ;;  %vm4542_vm9 = vsmask.f32 7424  ;;  %278 = vst [vmem:[#allocation2 + $0x44] sm:$0x1] %v3560_v48  ;;  %3265 = vmatprep.subr.bf16.mxu0 %v3558_v1  ;;  %277 = vst [vmem:[#allocation2 + $0x38] sm:$0x8] %v276_v50 }
  0x31   : > { %v598_v44 = vsel %vm4542_vm9, %v593_v16, %v597_v23  ;;  %v454_v45 = vor.u32 %v453_v39, %v450_v38  ;;  %v464_v52 = vor.u32 %v463_v43, %v459_v41  ;;  %v605_v56 = vrot.slane %v603_v40, 1  ;;  %v3875_v58 = vld [vmem:[#allocation2 + $0x20] sm:$0xff]   ;;  %v3504_v59 = vld [vmem:[%s4483_s1 + $0x98] sm:$0xff]   ;;  %v3508_v11 = vld [vmem:[%s4483_s1 + $0xa8] sm:$0xff]  }
  0x32   : > { %3178 = vmatmul.mubr.bf16.gmra.mrb[4].mxu0 %v598_v44  ;;  %vm4545_vm2 = vcmask 1043456   ;;  %v607_v4 = vshrl.u32 %v3848_v28, 16  ;;  %v611_v6 = vshll.u32 %v3875_v58, 16  ;;  %v3506_v7 = vld [vmem:[%s4483_s1 + $0xa0] sm:$0xff]   ;;  %v3510_v18 = vld [vmem:[%s4483_s1 + $0xb0] sm:$0xff]   ;;  %v615_v21 = vshrl.u32 %v3875_v58, 16 }
  0x33   : > { %v455_v51 = vrot.slane %v454_v45, 4  ;;  %v469_v53 = vld [vmem:[#allocation2 + $0x30] sm:$0x8]  ;;  %3181 = vmatprep.mubr.msk.bf16.mxu0 %vm4524_vm3, %v3558_v1  ;;  %3266 = vmatpush3.bf16.msra.mxu0 %v3502_v35  ;;  %v465_v0 = vrot.slane %v464_v52, 4  ;;  %vm3890_vm15 = vmand %vm4545_vm2, %vm268_vm0  ;;  %v606_v3 = vsel %vm4542_vm9, %v601_v55, %v605_v56  ;;  %v3512_v26 = vld [vmem:[%s4483_s1 + $0xb8] sm:$0xff]  }
  0x34   : > { %v470_v63 = vsel %vm3859_vm4, %v450_v38, %v469_v53  ;;  %3267 = vmatprep.subr.bf16.mxu0 %v3558_v1  ;;  %v609_v12 = vor.u32 %v607_v4, %v605_v56  ;;  %v613_v14 = vrot.slane %v611_v6, 1  ;;  %vm4548_vm0 = vmmov %vm4542_vm9  ;;  %v996_v4 = vrot.slane %v3775_v34, 1  ;;  %v3547_v37 = vld [vmem:[%s4485_s3 + $0xb0] sm:$0xff]  }
  0x35   : > { %v460_v60 = vsel %vm3867_vm1, %v455_v51, %v459_v41  ;;  %471 = vst [vmem:[#allocation2 + $0x30] sm:$0x8] %v470_v63  ;;  %vm4549_vm2 = vmmov %vm4548_vm0  ;;  %v498_v41 = vld [vmem:[#allocation2 + $0x40] sm:$0xf]  ;;  %v1002_v34 = vrot.slane %v3875_v58, 1 }
  0x36   : > { %472 = vst [vmem:[#allocation2 + $0x34] sm:$0xf] %v460_v60  ;;  %v3908_v15 = vld [vmem:[#allocation2 + $0x28] sm:$0xff]   ;;  %v614_v20 = vsel %vm4548_vm0, %v609_v12, %v613_v14  ;;  %v617_v24 = vor.u32 %v615_v21, %v613_v14  ;;  %vm4550_vm9 = vmmov %vm4548_vm0  ;;  %v2778_v56 = vcombine.low %v498_v41, %v498_v41  ;;  %v973_v60 = vld [vmem:[#allocation2] sm:$0xe] }
  0x37   : > { %3234 = vmatmul.mubr.bf16.gmra.mrb[8].mxu1 %v3811_v62  ;;  %3268 = vmatpush3.bf16.msra.mxu0 %v3504_v59  ;;  %v474_v9 = vld [vmem:[#allocation2 + $0x38] sm:$0xf]  ;;  %v619_v22 = vshll.u32 %v3908_v15, 16  ;;  %v623_v27 = vshrl.u32 %v3908_v15, 16  ;;  %v515_v43 = vld [vmem:[#allocation2 + $0x44] sm:$0x1] }
  0x38   : > { %3237 = vmatprep.mubr.msk.bf16.mxu1 %vm4524_vm3, %v3558_v1  ;;  %3269 = vmatprep.subr.bf16.mxu0 %v3558_v1  ;;  %v475_v10 = vsel %vm3890_vm15, %v465_v0, %v474_v9  ;;  %v2769_v47 = vcombine.low %v498_v41, %v515_v43  ;;  %v2803_v0 = vcombine.low %v973_v60, %v3755_v17  ;;  %v1000_v17 = vrot.slane %v3848_v28, 1  ;;  %v3516_v21 = vld [vmem:[%s4485_s3 + $0x48] sm:$0xff]   ;;  %v3531_v41 = vld [vmem:[%s4485_s3 + $0x78] sm:$0xff]  }
  0x39   : > { %476 = vst [vmem:[#allocation2 + $0x38] sm:$0xf] %v475_v10  ;;  %v621_v25 = vrot.slane %v619_v22, 1  ;;  %v3517_v22 = vld [vmem:[%s4485_s3 + $0x50] sm:$0xff]  }
  0x3a   : > { %3182 = vmatmul.mubr.bf16.gmra.mrb[8].mxu0 %v606_v3  ;;  %v643_v51 = vshll.u32 %v2769_v47, 16  ;;  %v647_v59 = vshrl.u32 %v2769_v47, 16  ;;  %v995_v3 = vrot.slane %v2803_v0, 1 }
  0x3b   : > { %3185 = vmatprep.mubr.msk.bf16.mxu0 %vm4524_vm3, %v3558_v1  ;;  %3270 = vmatpush3.bf16.msra.mxu0 %v3506_v7  ;;  %v622_v32 = vsel %vm4549_vm2, %v617_v24, %v621_v25  ;;  %v625_v36 = vor.u32 %v623_v27, %v621_v25  ;;  %vm4551_vm2 = vmmov %vm4548_vm0  ;;  %v998_v7 = vrot.slane %v3811_v62, 1  ;;  %v1004_v62 = vrot.slane %v3908_v15, 1  ;;  %v3519_v24 = vld [vmem:[%s4485_s3] sm:$0xff]   ;;  %v3520_v25 = vld [vmem:[%s4485_s3 + $0x8] sm:$0xff]  }
  0x3c   : > { %3271 = vmatprep.subr.bf16.mxu0 %v3558_v1  ;;  %v645_v53 = vrot.slane %v643_v51, 1  ;;  %v3523_v27 = vld [vmem:[%s4485_s3 + $0x18] sm:$0xff]  }
  0x3d   : > { %v3914_v16 = vld [vmem:[#allocation2 + $0x30] sm:$0xff]  }
  0x3e   : > { %v627_v23 = vshll.u32 %v3914_v16, 16  ;;  %v631_v39 = vshrl.u32 %v3914_v16, 16  ;;  %v649_v63 = vor.u32 %v647_v59, %v645_v53 }
  0x3f   : > { %3238 = vmatmul.mubr.bf16.gmra.mrb[12].mxu1 %v3848_v28  ;;  %3272 = vmatpush3.bf16.msra.mxu0 %v3508_v11  ;;  %v1006_v28 = vrot.slane %v3914_v16, 1 }
  0x40   : > { %3241 = vmatprep.mubr.msk.bf16.mxu1 %vm4524_vm3, %v3558_v1  ;;  %3273 = vmatprep.subr.bf16.mxu0 %v3558_v1  ;;  %v629_v30 = vrot.slane %v627_v23, 1  ;;  %v3936_v35 = vld [vmem:[#allocation2 + $0x38] sm:$0xff]  }
  0x41   : > { %v635_v40 = vshll.u32 %v3936_v35, 16  ;;  %v639_v50 = vshrl.u32 %v3936_v35, 16  ;;  %v3518_v23 = vld [vmem:[%s4485_s3 + $0x58] sm:$0xff]  }
  0x42   : > { %3186 = vmatmul.mubr.bf16.gmra.mrb[12].mxu0 %v614_v20  ;;  %v630_v38 = vsel %vm4550_vm9, %v625_v36, %v629_v30  ;;  %v633_v44 = vor.u32 %v631_v39, %v629_v30  ;;  %vm994_vm9 = vcmask 1046528   ;;  %v3524_v30 = vld [vmem:[%s4485_s3 + $0x20] sm:$0xff]   ;;  %v3527_v36 = vld [vmem:[%s4485_s3 + $0x30] sm:$0xff]   ;;  %v3525_v39 = vld [vmem:[%s4485_s3 + $0x68] sm:$0xff]  }
  0x43   : > { %3189 = vmatprep.mubr.msk.bf16.mxu0 %vm4524_vm3, %v3558_v1  ;;  %3274 = vmatpush3.bf16.msra.mxu0 %v3510_v18  ;;  %v637_v45 = vrot.slane %v635_v40, 1  ;;  %v997_v6 = vsel %vm994_vm9, %v995_v3, %v996_v4  ;;  %v999_v9 = vsel %vm994_vm9, %v996_v4, %v998_v7  ;;  %v1001_v10 = vsel %vm994_vm9, %v998_v7, %v1000_v17  ;;  %v3528_v40 = vld [vmem:[%s4485_s3 + $0x70] sm:$0xff]  }
  0x44   : > { %3275 = vmatprep.subr.bf16.mxu0 %v3558_v1  ;;  %v1003_v11 = vsel %vm994_vm9, %v1000_v17, %v1002_v34  ;;  %v1005_v12 = vsel %vm994_vm9, %v1002_v34, %v1004_v62  ;;  %v1007_v14 = vsel %vm994_vm9, %v1004_v62, %v1006_v28 }
  0x45   : > { %v638_v48 = vsel %vm4548_vm0, %v633_v44, %v637_v45  ;;  %v641_v52 = vor.u32 %v639_v50, %v637_v45 }
  0x47   : > { %3242 = vmatmul.mubr.bf16.gmra.mrb[16].mxu1 %v3875_v58  ;;  %3276 = vmatpush3.bf16.msra.mxu0 %v3512_v26  ;;  %v646_v55 = vsel %vm4551_vm2, %v641_v52, %v645_v53  ;;  %v1008_v58 = vrot.slane %v3936_v35, 1  ;;  %v3521_v26 = vld [vmem:[%s4485_s3 + $0x10] sm:$0xff]   ;;  %vm4562_vm2 = vcmask 1042432  }
  0x48   : > { %3245 = vmatprep.mubr.msk.bf16.mxu1 %vm4524_vm3, %v3558_v1  ;;  %3365 = vmatprep.subr.bf16.mxu0 %v3558_v1 }
  0x49   : > { %v1009_v18 = vsel %vm994_vm9, %v1006_v28, %v1008_v58 }
  0x4a   : > { %3190 = vmatmul.mubr.bf16.gmra.mrb[16].mxu0 %v622_v32  ;;  %v3526_v32 = vld [vmem:[%s4485_s3 + $0x28] sm:$0xff]  }
  0x4b   : > { %3193 = vmatprep.mubr.msk.bf16.mxu0 %vm4524_vm3, %v3558_v1 }
  0x4f   : > { %3246 = vmatmul.mubr.bf16.gmra.mrb[20].mxu1 %v3908_v15  ;;  %v1010_v15 = vrot.slane %v2769_v47, 1 }
  0x50   : > { %3249 = vmatprep.mubr.msk.bf16.mxu1 %vm4524_vm3, %v3558_v1 }
  0x51   : > { %v1011_v20 = vsel %vm994_vm9, %v1008_v58, %v1010_v15 }
  0x52   : > { %3194 = vmatmul.mubr.bf16.gmra.mrb[20].mxu0 %v630_v38  ;;  %v3529_v38 = vld [vmem:[%s4485_s3 + $0x38] sm:$0xff]  }
  0x53   : > { %3197 = vmatprep.mubr.msk.bf16.mxu0 %vm4524_vm3, %v3558_v1 }
  0x57   : > { %3250 = vmatmul.mubr.bf16.gmra.mrb[24].mxu1 %v3914_v16  ;;  %v3515_v16 = vld [vmem:[%s4485_s3 + $0x40] sm:$0xff]  }
  0x58   : > { %3253 = vmatprep.mubr.msk.bf16.mxu1 %vm4524_vm3, %v3558_v1  ;;  %3314 = vmatpush3.bf16.msra.mxu1 %v3515_v16 }
  0x59   : > { %3315 = vmatprep.subr.bf16.mxu1 %v3558_v1 }
  0x5a   : > { %3198 = vmatmul.mubr.bf16.gmra.mrb[24].mxu0 %v638_v48 }
  0x5b   : > { %3201 = vmatprep.mubr.msk.bf16.mxu0 %vm4524_vm3, %v3558_v1 }
  0x5c   : > { %3316 = vmatpush3.bf16.msra.mxu1 %v3516_v21 }
  0x5d   : > { %3317 = vmatprep.subr.bf16.mxu1 %v3558_v1 }
  0x5f   : > { %3254 = vmatmul.mubr.bf16.gmra.mrb[28].mxu1 %v3936_v35  ;;  %v3522_v35 = vld [vmem:[%s4485_s3 + $0x60] sm:$0xff]  }
  0x60   : > { %3257 = vmatprep.mubr.msk.bf16.mxu1 %vm4524_vm3, %v3558_v1  ;;  %3318 = vmatpush3.bf16.msra.mxu1 %v3517_v22 }
  0x61   : > { %3319 = vmatprep.subr.bf16.mxu1 %v3558_v1 }
  0x62   : > { %3202 = vmatmul.mubr.bf16.gmra.mrb[28].mxu0 %v646_v55 }
  0x63   : > { %3205 = vmatprep.mubr.msk.bf16.mxu0 %vm4524_vm3, %v3558_v1 }
  0x64   : > { %3320 = vmatpush3.bf16.msra.mxu1 %v3518_v23 }
  0x65   : > { %3321 = vmatprep.subr.bf16.mxu1 %v3558_v1 }
  0x67   : > { %3258 = vmatmul.mubr.bf16.gmra.mrb[32].mxu1 %v2778_v56 }
  0x68   : > { %3329 = vmatprep.mubr.msk.bf16.mxu1 %vm4524_vm3, %v3558_v1  ;;  %3322 = vmatpush3.bf16.msra.mxu1 %v3522_v35 }
  0x69   : > { %3323 = vmatprep.subr.bf16.mxu1 %v3558_v1 }
  0x6a   : > { %3206 = vmatmul.mubr.bf16.gmra.mrb[32].mxu0 %v649_v63 }
  0x6b   : > { %3277 = vmatprep.mubr.msk.bf16.mxu0 %vm4524_vm3, %v3558_v1 }
  0x6c   : > { %3324 = vmatpush3.bf16.msra.mxu1 %v3525_v39 }
  0x6d   : > { %3325 = vmatprep.subr.bf16.mxu1 %v3558_v1 }
  0x70   : > { %3326 = vmatpush3.bf16.msra.mxu1 %v3528_v40 }
  0x71   : > { %3327 = vmatprep.subr.bf16.mxu1 %v3558_v1 }
  0x72   : > { %3278 = vmatmul.mubr.bf16.vlgmr.msra.gmra.mrb[36].mxu0 %v997_v6 }
  0x73   : > { %3281 = vmatprep.mubr.msk.bf16.mxu0 %vm4524_vm3, %v3558_v1  ;;  %3366 = vmatpush3.bf16.msra.mxu0 %v3519_v24 }
  0x74   : > { %3367 = vmatprep.subr.bf16.mxu0 %v3558_v1  ;;  %3328 = vmatpush3.bf16.msra.mxu1 %v3531_v41 }
  0x75   : > { %3417 = vmatprep.subr.bf16.mxu1 %v3558_v1 }
  0x77   : > { %3368 = vmatpush3.bf16.msra.mxu0 %v3520_v25 }
  0x78   : > { %3369 = vmatprep.subr.bf16.mxu0 %v3558_v1 }
  0x7a   : > { %3282 = vmatmul.mubr.bf16.gmra.mrb[40].mxu0 %v999_v9 }
  0x7b   : > { %3285 = vmatprep.mubr.msk.bf16.mxu0 %vm4524_vm3, %v3558_v1  ;;  %3370 = vmatpush3.bf16.msra.mxu0 %v3521_v26 }
  0x7c   : > { %3371 = vmatprep.subr.bf16.mxu0 %v3558_v1 }
  0x7f   : > { %3372 = vmatpush3.bf16.msra.mxu0 %v3523_v27 }
  0x80   : > { %3373 = vmatprep.subr.bf16.mxu0 %v3558_v1 }
  0x82   : > { %3286 = vmatmul.mubr.bf16.gmra.mrb[44].mxu0 %v1001_v10 }
  0x83   : > { %3289 = vmatprep.mubr.msk.bf16.mxu0 %vm4524_vm3, %v3558_v1  ;;  %3374 = vmatpush3.bf16.msra.mxu0 %v3524_v30 }
  0x84   : > { %3375 = vmatprep.subr.bf16.mxu0 %v3558_v1 }
  0x87   : > { %3376 = vmatpush3.bf16.msra.mxu0 %v3526_v32 }
  0x88   : > { %3377 = vmatprep.subr.bf16.mxu0 %v3558_v1 }
  0x8a   : > { %3290 = vmatmul.mubr.bf16.gmra.mrb[48].mxu0 %v1003_v11 }
  0x8b   : > { %3293 = vmatprep.mubr.msk.bf16.mxu0 %vm4524_vm3, %v3558_v1  ;;  %3378 = vmatpush3.bf16.msra.mxu0 %v3527_v36 }
  0x8c   : > { %3379 = vmatprep.subr.bf16.mxu0 %v3558_v1 }
  0x8f   : > { %3380 = vmatpush3.bf16.msra.mxu0 %v3529_v38 }
  0x92   : > { %3294 = vmatmul.mubr.bf16.gmra.mrb[52].mxu0 %v1005_v12 }
  0x93   : > { %3297 = vmatprep.mubr.msk.bf16.mxu0 %vm4524_vm3, %v3558_v1 }
  0x9a   : > { %3298 = vmatmul.mubr.bf16.gmra.mrb[56].mxu0 %v1007_v14 }
  0x9b   : > { %3301 = vmatprep.mubr.msk.bf16.mxu0 %vm4524_vm3, %v3558_v1 }
  0xa2   : > { %3302 = vmatmul.mubr.bf16.gmra.mrb[60].mxu0 %v1009_v18 }
  0xa3   : > { %3305 = vmatprep.mubr.msk.bf16.mxu0 %vm4524_vm3, %v3558_v1 }
  0xaa   : > { %3306 = vmatmul.mubr.bf16.gmra.mrb[64].mxu0 %v1011_v20 }
  0xab   : > { %3309 = vmatprep.mubr.msk.bf16.mxu0 %vm4524_vm3, %v3558_v1 }
  0xb2   : > { %3310 = vmatmul.mubr.bf16.gmra.mrb[68].mxu0 %v1010_v15 }
  0xb3   : > { %3381 = vmatprep.mubr.msk.bf16.mxu0 %vm4524_vm3, %v3558_v1 }
  0xfa   : > { %v903_v43 = vpop.f32.mrb[0].mxu1 }
  0xfb   : > { %v3227_v44 = vpop.f32.mrb[1].mxu1 }
  0xfc   : > { %v906_v45 = vpop.f32.mrb[2].mxu1 }
  0xfd   : > { %v3228_v47 = vpop.f32.mrb[3].mxu1  ;;  %v741_v48 = vpop.f32.mrb[0].mxu0 }
  0xfe   : > { %v4062_v50 = vadd.f32 %v903_v43, %v741_v48  ;;  %v3175_v51 = vpop.f32.mrb[1].mxu0 }
  0xff   : > { %v744_v52 = vpop.f32.mrb[2].mxu0 }
 0x100   : > { %v4064_v55 = vadd.f32 %v906_v45, %v744_v52  ;;  %v3176_v56 = vpop.f32.mrb[3].mxu0 }
 0x102   : > { %v911_v53 = vpop.f32.mrb[4].mxu1 }
 0x103   : > { %v3231_v59 = vpop.f32.mrb[5].mxu1 }
 0x104   : > { %v914_v60 = vpop.f32.mrb[6].mxu1 }
 0x105   : > { %v3232_v63 = vpop.f32.mrb[7].mxu1  ;;  %v749_v0 = vpop.f32.mrb[4].mxu0 }
 0x106   : > { %v4066_v3 = vadd.f32 %v911_v53, %v749_v0  ;;  %v3179_v4 = vpop.f32.mrb[5].mxu0 }
 0x107   : > { %v752_v6 = vpop.f32.mrb[6].mxu0 }
 0x108   : > { %v4068_v9 = vadd.f32 %v914_v60, %v752_v6  ;;  %v3180_v17 = vpop.f32.mrb[7].mxu0 }
 0x10a   : > { %v919_v7 = vpop.f32.mrb[8].mxu1 }
 0x10b   : > { %v3235_v10 = vpop.f32.mrb[9].mxu1 }
 0x10c   : > { %v922_v34 = vpop.f32.mrb[10].mxu1 }
 0x10d   : > { %v3236_v11 = vpop.f32.mrb[11].mxu1  ;;  %v757_v62 = vpop.f32.mrb[8].mxu0 }
 0x10e   : > { %v4070_v12 = vadd.f32 %v919_v7, %v757_v62  ;;  %v3183_v28 = vpop.f32.mrb[9].mxu0 }
 0x10f   : > { %v760_v14 = vpop.f32.mrb[10].mxu0 }
 0x110   : > { %v4072_v18 = vadd.f32 %v922_v34, %v760_v14  ;;  %v3184_v15 = vpop.f32.mrb[11].mxu0 }
 0x112   : > { %v927_v58 = vpop.f32.mrb[12].mxu1 }
 0x113   : > { %v3239_v20 = vpop.f32.mrb[13].mxu1 }
 0x114   : > { %v930_v16 = vpop.f32.mrb[14].mxu1 }
 0x115   : > { %v3240_v21 = vpop.f32.mrb[15].mxu1  ;;  %v765_v22 = vpop.f32.mrb[12].mxu0 }
 0x116   : > { %v4074_v23 = vadd.f32 %v927_v58, %v765_v22  ;;  %v3187_v24 = vpop.f32.mrb[13].mxu0 }
 0x117   : > { %v768_v25 = vpop.f32.mrb[14].mxu0 }
 0x118   : > { %v4076_v27 = vadd.f32 %v930_v16, %v768_v25  ;;  %v3188_v30 = vpop.f32.mrb[15].mxu0 }
 0x11a   : > { %v935_v26 = vpop.f32.mrb[16].mxu1 }
 0x11b   : > { %v3243_v32 = vpop.f32.mrb[17].mxu1 }
 0x11c   : > { %v938_v35 = vpop.f32.mrb[18].mxu1 }
 0x11d   : > { %v3244_v36 = vpop.f32.mrb[19].mxu1  ;;  %v773_v38 = vpop.f32.mrb[16].mxu0 }
 0x11e   : > { %v4078_v39 = vadd.f32 %v935_v26, %v773_v38  ;;  %v3191_v40 = vpop.f32.mrb[17].mxu0 }
 0x11f   : > { %v776_v41 = vpop.f32.mrb[18].mxu0 }
 0x120   : > { %v4080_v44 = vadd.f32 %v938_v35, %v776_v41  ;;  %v3192_v45 = vpop.f32.mrb[19].mxu0 }
 0x122   : > { %v943_v43 = vpop.f32.mrb[20].mxu1 }
 0x123   : > { %v3247_v47 = vpop.f32.mrb[21].mxu1 }
 0x124   : > { %v946_v48 = vpop.f32.mrb[22].mxu1 }
 0x125   : > { %v3248_v51 = vpop.f32.mrb[23].mxu1  ;;  %v781_v52 = vpop.f32.mrb[20].mxu0 }
 0x126   : > { %v4082_v53 = vadd.f32 %v943_v43, %v781_v52  ;;  %v3195_v56 = vpop.f32.mrb[21].mxu0 }
 0x127   : > { %v784_v59 = vpop.f32.mrb[22].mxu0 }
 0x128   : > { %v4084_v63 = vadd.f32 %v946_v48, %v784_v59  ;;  %v3196_v0 = vpop.f32.mrb[23].mxu0  ;;  %v4099_v48 = vld [vmem:[%s4484_s2] ss:$0 sm:$0xff] }
 0x12a   : > { %v951_v60 = vpop.f32.mrb[24].mxu1 }
 0x12b   : > { %v3251_v4 = vpop.f32.mrb[25].mxu1 }
 0x12c   : > { %v954_v6 = vpop.f32.mrb[26].mxu1 }
 0x12d   : > { %v3252_v7 = vpop.f32.mrb[27].mxu1  ;;  %v789_v17 = vpop.f32.mrb[24].mxu0 }
 0x12e   : > { %v4086_v10 = vadd.f32 %v951_v60, %v789_v17  ;;  %v3199_v34 = vpop.f32.mrb[25].mxu0 }
 0x12f   : > { %v792_v11 = vpop.f32.mrb[26].mxu0 }
 0x130   : > { %v4088_v28 = vadd.f32 %v954_v6, %v792_v11  ;;  %v3200_v14 = vpop.f32.mrb[27].mxu0 }
 0x132   : > { %v959_v62 = vpop.f32.mrb[28].mxu1 }
 0x133   : > { %v3255_v58 = vpop.f32.mrb[29].mxu1 }
 0x134   : > { %v962_v15 = vpop.f32.mrb[30].mxu1 }
 0x135   : > { %v3256_v20 = vpop.f32.mrb[31].mxu1  ;;  %v797_v16 = vpop.f32.mrb[28].mxu0 }
 0x136   : > { %v4090_v21 = vadd.f32 %v959_v62, %v797_v16  ;;  %v3203_v22 = vpop.f32.mrb[29].mxu0 }
 0x137   : > { %v800_v24 = vpop.f32.mrb[30].mxu0 }
 0x138   : > { %v4092_v26 = vadd.f32 %v962_v15, %v800_v24  ;;  %v3204_v30 = vpop.f32.mrb[31].mxu0 }
 0x13a   : > { %v967_v25 = vpop.f32.mrb[32].mxu1 }
 0x13b   : > { %v3259_v32 = vpop.f32.mrb[33].mxu1 }
 0x13c   : > { %v970_v35 = vpop.f32.mrb[34].mxu1 }
 0x13d   : > { %v3260_v36 = vpop.f32.mrb[35].mxu1  ;;  %v805_v38 = vpop.f32.mrb[32].mxu0 }
 0x13e   : > { %v3207_v40 = vpop.f32.mrb[33].mxu0  ;;  %v4094_v41 = vadd.f32 %v967_v25, %v805_v38 }
 0x13f   : > { %v808_v43 = vpop.f32.mrb[34].mxu0  ;;  %v1261_v40 = vld [vmem:[#allocation2 + $0x8] sm:$0x1] }
 0x140   : > { %v3208_v45 = vpop.f32.mrb[35].mxu0 }
 0x145   : > { %v1103_v47 = vpop.f32.mrb[36].mxu0 }
 0x146   : > { %v1173_v51 = vadd.f32 %v1103_v47, %v4062_v50  ;;  %v3279_v52 = vpop.f32.mrb[37].mxu0 }
 0x147   : > { %v1106_v56 = vpop.f32.mrb[38].mxu0 }
 0x148   : > { %v1197_v59 = vadd.f32 %v4099_v48, %v1173_v51  ;;  %v1174_v60 = vadd.f32 %v1106_v56, %v4064_v55  ;;  %v3280_v0 = vpop.f32.mrb[39].mxu0  ;;  %v1257_v55 = vld [vmem:[#allocation2] sm:$0xf] }
 0x14a   : > { %v1214_v4 = vmax.f32 %v1197_v59, 0.0  ;;  %v1198_v6 = vadd.f32 %v4099_v48, %v1174_v60 }
 0x14c   : > { %v2965_v7 = vpack.c.bf16 %v1214_v4, %v1214_v4  ;;  %v1215_v17 = vmax.f32 %v1198_v6, 0.0 }
 0x14d   : > { %v1111_v34 = vpop.f32.mrb[40].mxu0 }
 0x14e   : > { %v1238_v11 = vshrl.u32 %v2965_v7, 16  ;;  %v2966_v62 = vpack.c.bf16 %v1215_v17, %v1215_v17  ;;  %v1175_v14 = vadd.f32 %v1111_v34, %v4066_v3  ;;  %v3283_v58 = vpop.f32.mrb[41].mxu0  ;;  %v1241_v20 = vshll.u32 %v2965_v7, 16 }
 0x14f   : > { %v1114_v15 = vpop.f32.mrb[42].mxu0 }
 0x150   : > { %v1240_v50 = vrot.slane %v1238_v11, 7  ;;  %v1246_v16 = vshrl.u32 %v2966_v62, 16  ;;  %v1199_v22 = vadd.f32 %v4099_v48, %v1175_v14  ;;  %v3284_v24 = vpop.f32.mrb[43].mxu0  ;;  %v1176_v25 = vadd.f32 %v1114_v15, %v4068_v9 }
 0x151   : > { %v1249_v35 = vshll.u32 %v2966_v62, 16 }
 0x152   : > { %v1243_v30 = vor.u32 %v1241_v20, %v1240_v50  ;;  %v1248_v32 = vrot.slane %v1246_v16, 7  ;;  %v1216_v36 = vmax.f32 %v1199_v22, 0.0  ;;  %v1244_v38 = vrot.slane %v1240_v50, 4 }
 0x153   : > { %v1200_v43 = vadd.f32 %v4099_v48, %v1176_v25 }
 0x154   : > { %v1258_v3 = vsel %vm3700_vm5, %v1243_v30, %v1257_v55  ;;  %v1251_v45 = vor.u32 %v1249_v35, %v1248_v32  ;;  %v1253_v47 = vrot.slane %v1248_v32, 4  ;;  %v2967_v51 = vpack.c.bf16 %v1216_v36, %v1216_v36  ;;  %vm4553_vm5 = vmmov %vm4548_vm0 }
 0x155   : > { %1259 = vst [vmem:[#allocation2] sm:$0xf] %v1258_v3  ;;  %v1217_v52 = vmax.f32 %v1200_v43, 0.0  ;;  %v1119_v56 = vpop.f32.mrb[44].mxu0 }
 0x156   : > { %v1252_v9 = vsel %vm3689_vm14, %v1244_v38, %v1251_v45  ;;  %v1262_v59 = vsel %vm3658_vm7, %v1253_v47, %v1261_v40  ;;  %v1275_v60 = vshrl.u32 %v2967_v51, 16  ;;  %v3287_v0 = vpop.f32.mrb[45].mxu0  ;;  %v1177_v42 = vadd.f32 %v1119_v56, %v4070_v12  ;;  %vm4552_vm7 = vmmov %vm4548_vm0 }
 0x157   : > { %1260 = vst [vmem:[#allocation2 + $0x4] sm:$0xf] %v1252_v9  ;;  %1263 = vst [vmem:[#allocation2 + $0x8] sm:$0x1] %v1262_v59  ;;  %v2968_v4 = vpack.c.bf16 %v1217_v52, %v1217_v52  ;;  %v1122_v6 = vpop.f32.mrb[46].mxu0  ;;  %v1278_v17 = vshll.u32 %v2967_v51, 16 }
 0x158   : > { %v1277_v7 = vrot.slane %v1275_v60, 7  ;;  %v1178_v34 = vadd.f32 %v1122_v6, %v4072_v18  ;;  %v3288_v11 = vpop.f32.mrb[47].mxu0  ;;  %v1201_v14 = vadd.f32 %v4099_v48, %v1177_v42  ;;  %v1339_v59 = vld [vmem:[#allocation2 + $0x10] sm:$0xe] }
 0x159   : > { %v1283_v62 = vshrl.u32 %v2968_v4, 16  ;;  %v1286_v50 = vshll.u32 %v2968_v4, 16 }
 0x15a   : > { %v1280_v58 = vor.u32 %v1278_v17, %v1277_v7  ;;  %v1202_v13 = vadd.f32 %v4099_v48, %v1178_v34  ;;  %v1218_v20 = vmax.f32 %v1201_v14, 0.0  ;;  %v1281_v22 = vrot.slane %v1277_v7, 4 }
 0x15b   : > { %v1285_v15 = vrot.slane %v1283_v62, 7 }
 0x15c   : > { %1298 = vst [vmem:[#allocation2 + $0x8] sm:$0xe] %v1280_v58  ;;  %v1219_v16 = vmax.f32 %v1202_v13, 0.0  ;;  %v2969_v12 = vpack.c.bf16 %v1218_v20, %v1218_v20  ;;  %v1553_v35 = vld [vmem:[#allocation2] sm:$0xf] }
 0x15d   : > { %v1288_v24 = vor.u32 %v1286_v50, %v1285_v15  ;;  %v1127_v55 = vpop.f32.mrb[48].mxu0  ;;  %v1290_v25 = vrot.slane %v1285_v15, 4  ;;  %v2043_v62 = vld [vmem:[#allocation2] sm:$0xe] }
 0x15e   : > { %v2971_v30 = vpack.c.bf16 %v1219_v16, %v1219_v16  ;;  %v1179_v18 = vadd.f32 %v1127_v55, %v4074_v23  ;;  %v3291_v32 = vpop.f32.mrb[49].mxu0  ;;  %v1554_v36 = vld [vmem:[#allocation2 + $0x4] sm:$0xf]  ;;  %v1292_v40 = vshll.u32 %v2969_v12, 16  ;;  %v1312_v43 = vshrl.u32 %v2969_v12, 16 }
 0x15f   : > { %v1289_v38 = vsel %vm3689_vm14, %v1281_v22, %v1288_v24  ;;  %v1130_v3 = vpop.f32.mrb[50].mxu0  ;;  %v2854_v45 = vcombine.low %v1553_v35, %v1554_v36  ;;  %v2896_v13 = vcombine.low %v2043_v62, %v1554_v36 }
 0x160   : > { %1299 = vst [vmem:[#allocation2 + $0xc] sm:$0xf] %v1289_v38  ;;  %v1320_v47 = vshrl.u32 %v2971_v30, 16  ;;  %v1203_v51 = vadd.f32 %v4099_v48, %v1179_v18  ;;  %v1180_v52 = vadd.f32 %v1130_v3, %v4076_v27  ;;  %v3292_v56 = vpop.f32.mrb[51].mxu0  ;;  %v1294_v23 = vsel %vm3689_vm14, %v1290_v25, %v1292_v40 }
 0x161   : > { %v1314_v9 = vrot.slane %v1312_v43, 7  ;;  %3382 = vmatmul.mubr.bf16.vlgmr.msra.gmra.mrb[72].mxu0 %v2854_v45  ;;  %1300 = vst [vmem:[#allocation2 + $0x10] sm:$0x1] %v1294_v23  ;;  %v1323_v0 = vshll.u32 %v2971_v30, 16  ;;  %v1652_v7 = vshll.u32 %v2854_v45, 16  ;;  %v1650_v22 = vshrl.u32 %v2854_v45, 16 }
 0x162   : > { %v1322_v60 = vrot.slane %v1320_v47, 7  ;;  %v1220_v4 = vmax.f32 %v1203_v51, 0.0  ;;  %v1204_v42 = vadd.f32 %v4099_v48, %v1180_v52  ;;  %3385 = vmatprep.mubr.msk.bf16.mxu0 %vm4524_vm3, %v3558_v1  ;;  %v2064_v43 = vrot.slane %v2896_v13, 1  ;;  %v1343_v45 = vld [vmem:[#allocation2 + $0x18] sm:$0x3] }
 0x163   : > { %v1317_v6 = vor.u32 %v1314_v9, %v1292_v40  ;;  %v1318_v17 = vrot.slane %v1314_v9, 4  ;;  %v1654_v30 = vrot.slane %v1652_v7, 1  ;;  %v3533_v9 = vld [vmem:[%s4485_s3 + $0x80] sm:$0xff]  }
 0x164   : > { %v1325_v27 = vor.u32 %v1323_v0, %v1322_v60  ;;  %v2972_v34 = vpack.c.bf16 %v1220_v4, %v1220_v4  ;;  %v1221_v11 = vmax.f32 %v1204_v42, 0.0  ;;  %v1327_v24 = vrot.slane %v1322_v60, 4 }
 0x165   : > { %v1340_v14 = vsel %vm3739_vm12, %v1317_v6, %v1339_v59  ;;  %v1135_v58 = vpop.f32.mrb[52].mxu0  ;;  %v1655_v56 = vor.u32 %v1654_v30, %v1650_v22  ;;  %vm4554_vm12 = vmmov %vm4548_vm0 }
 0x166   : > { %1341 = vst [vmem:[#allocation2 + $0x10] sm:$0xe] %v1340_v14  ;;  %v1326_v15 = vsel %vm3689_vm14, %v1318_v17, %v1325_v27  ;;  %v1329_v50 = vshrl.u32 %v2972_v34, 16  ;;  %v2974_v20 = vpack.c.bf16 %v1221_v11, %v1221_v11  ;;  %v3295_v16 = vpop.f32.mrb[53].mxu0  ;;  %v1181_v12 = vadd.f32 %v1135_v58, %v4078_v39 }
 0x167   : > { %1342 = vst [vmem:[#allocation2 + $0x14] sm:$0xf] %v1326_v15  ;;  %v1138_v55 = vpop.f32.mrb[54].mxu0  ;;  %v4134_v25 = vld [vmem:[#allocation2 + $0x8] sm:$0xff]   ;;  %v1332_v18 = vshll.u32 %v2972_v34, 16 }
 0x168   : > { %v1331_v5 = vrot.slane %v1329_v50, 7  ;;  %v1365_v32 = vshrl.u32 %v2974_v20, 16  ;;  %v1182_v35 = vadd.f32 %v1138_v55, %v4080_v44  ;;  %v3296_v36 = vpop.f32.mrb[55].mxu0  ;;  %v1205_v38 = vadd.f32 %v4099_v48, %v1181_v12  ;;  %v3535_v50 = vld [vmem:[%s4485_s3 + $0x88] sm:$0xff]  }
 0x169   : > { %3386 = vmatmul.mubr.bf16.gmra.mrb[76].mxu0 %v4134_v25  ;;  %v1657_v40 = vshll.u32 %v4134_v25, 16  ;;  %v2065_v3 = vrot.slane %v4134_v25, 1  ;;  %v1368_v51 = vshll.u32 %v2974_v20, 16  ;;  %v1661_v29 = vshrl.u32 %v4134_v25, 16 }
 0x16a   : > { %v1334_v39 = vor.u32 %v1332_v18, %v1331_v5  ;;  %v1367_v47 = vrot.slane %v1365_v32, 7  ;;  %v1206_v52 = vadd.f32 %v4099_v48, %v1182_v35  ;;  %3389 = vmatprep.mubr.msk.bf16.mxu0 %vm4524_vm3, %v3558_v1  ;;  %v1222_v44 = vmax.f32 %v1205_v38, 0.0 }
 0x16b   : > { %v1659_v23 = vrot.slane %v1657_v40, 1  ;;  %v4148_v59 = vsel %vm994_vm9, %v2064_v43, %v2065_v3  ;;  %v1363_v0 = vrot.slane %v1331_v5, 4  ;;  %v1425_v5 = vld [vmem:[#allocation2 + $0x20] sm:$0xc]  ;;  %v3538_v43 = vld [vmem:[%s4485_s3 + $0x90] sm:$0xff]  }
 0x16c   : > { %v1335_v60 = vsel %vm3689_vm14, %v1327_v24, %v1334_v39  ;;  %1384 = vst [vmem:[#allocation2 + $0x18] sm:$0xc] %v1334_v39  ;;  %v1370_v4 = vor.u32 %v1368_v51, %v1367_v47  ;;  %v1223_v42 = vmax.f32 %v1206_v52, 0.0  ;;  %v2975_v7 = vpack.c.bf16 %v1222_v44, %v1222_v44 }
 0x16d   : > { %v1344_v6 = vsel %vm3770_vm6, %v1335_v60, %v1343_v45  ;;  %v1143_v17 = vpop.f32.mrb[56].mxu0  ;;  %v1660_v27 = vsel %vm4552_vm7, %v1655_v56, %v1659_v23  ;;  %v1372_v20 = vrot.slane %v1367_v47, 4  ;;  %v1663_v38 = vor.u32 %v1661_v29, %v1659_v23  ;;  %vm4555_vm6 = vmmov %vm4548_vm0 }
 0x16e   : > { %1345 = vst [vmem:[#allocation2 + $0x18] sm:$0x3] %v1344_v6  ;;  %v1371_v34 = vsel %vm3689_vm14, %v1363_v0, %v1370_v4  ;;  %v2977_v11 = vpack.c.bf16 %v1223_v42, %v1223_v42  ;;  %v1183_v62 = vadd.f32 %v1143_v17, %v4082_v53  ;;  %v3299_v14 = vpop.f32.mrb[57].mxu0  ;;  %3330 = vmatmul.mubr.bf16.vlgmr.msra.gmra.mrb[36].mxu1 %v1660_v27  ;;  %v4158_v58 = vld [vmem:[#allocation2 + $0x10] sm:$0xff]   ;;  %v1374_v13 = vshrl.u32 %v2975_v7, 16  ;;  %v3540_v17 = vld [vmem:[%s4485_s3 + $0x98] sm:$0xff]  }
 0x16f   : > { %1385 = vst [vmem:[#allocation2 + $0x1c] sm:$0xf] %v1371_v34  ;;  %v1146_v15 = vpop.f32.mrb[58].mxu0  ;;  %3418 = vmatpush3.bf16.msra.mxu1 %v3533_v9  ;;  %3333 = vmatprep.mubr.msk.bf16.mxu1 %vm4524_vm3, %v3558_v1  ;;  %v1377_v55 = vshll.u32 %v2975_v7, 16  ;;  %v1665_v30 = vshll.u32 %v4158_v58, 16  ;;  %v2067_v25 = vrot.slane %v4158_v58, 1 }
 0x170   : > { %v1406_v16 = vshrl.u32 %v2977_v11, 16  ;;  %v1207_v53 = vadd.f32 %v4099_v48, %v1183_v62  ;;  %v1184_v22 = vadd.f32 %v1146_v15, %v4084_v63  ;;  %v3300_v24 = vpop.f32.mrb[59].mxu0  ;;  %3419 = vmatprep.subr.bf16.mxu1 %v3558_v1  ;;  %v1376_v12 = vrot.slane %v1374_v13, 7 }
 0x171   : > { %3390 = vmatmul.mubr.bf16.gmra.mrb[80].mxu0 %v4158_v58  ;;  %v1409_v32 = vshll.u32 %v2977_v11, 16  ;;  %v1667_v40 = vrot.slane %v1665_v30, 1  ;;  %v4179_v39 = vsel %vm994_vm9, %v2065_v3, %v2067_v25  ;;  %v1669_v46 = vshrl.u32 %v4158_v58, 16 }
 0x172   : > { %v1408_v18 = vrot.slane %v1406_v16, 7  ;;  %v1224_v35 = vmax.f32 %v1207_v53, 0.0  ;;  %v1208_v36 = vadd.f32 %v4099_v48, %v1184_v22  ;;  %3393 = vmatprep.mubr.msk.bf16.mxu0 %vm4524_vm3, %v3558_v1  ;;  %v1379_v63 = vor.u32 %v1377_v55, %v1376_v12 }
 0x173   : > { %3420 = vmatpush3.bf16.msra.mxu1 %v3535_v50  ;;  %v1404_v45 = vrot.slane %v1376_v12, 4  ;;  %v1668_v9 = vsel %vm4553_vm5, %v1663_v38, %v1667_v40  ;;  %v1429_v50 = vld [vmem:[#allocation2 + $0x28] sm:$0x7]  ;;  %v1671_v22 = vor.u32 %v1669_v46, %v1667_v40  ;;  %v3542_v12 = vld [vmem:[%s4485_s3 + $0xa0] sm:$0xff]   ;;  %v1510_v40 = vld [vmem:[#allocation2 + $0x30] sm:$0x8]  ;;  %vm4564_vm5 = vnez %v4512_v61 }
 0x174   : > { %v1411_v47 = vor.u32 %v1409_v32, %v1408_v18  ;;  %v2978_v51 = vpack.c.bf16 %v1224_v35, %v1224_v35  ;;  %v1225_v52 = vmax.f32 %v1208_v36, 0.0  ;;  %3421 = vmatprep.subr.bf16.mxu1 %v3558_v1  ;;  %v1380_v44 = vsel %vm3689_vm14, %v1372_v20, %v1379_v63 }
 0x175   : > { %v1426_v56 = vsel %vm3787_vm10, %v1379_v63, %v1425_v5  ;;  %v1151_v23 = vpop.f32.mrb[60].mxu0  ;;  %1386 = vst [vmem:[#allocation2 + $0x20] sm:$0x3] %v1380_v44  ;;  %vm4556_vm10 = vmmov %vm4548_vm0  ;;  %vm4563_vm7 = vcmask 1043456  }
 0x176   : > { %1427 = vst [vmem:[#allocation2 + $0x20] sm:$0xc] %v1426_v56  ;;  %v1412_v3 = vsel %vm3689_vm14, %v1404_v45, %v1411_v47  ;;  %v1415_v60 = vshrl.u32 %v2978_v51, 16  ;;  %v2980_v0 = vpack.c.bf16 %v1225_v52, %v1225_v52  ;;  %v3303_v4 = vpop.f32.mrb[61].mxu0  ;;  %3334 = vmatmul.mubr.bf16.gmra.mrb[40].mxu1 %v1668_v9  ;;  %v4189_v42 = vld [vmem:[#allocation2 + $0x18] sm:$0xff]   ;;  %v1185_v6 = vadd.f32 %v1151_v23, %v4086_v10  ;;  %v3544_v56 = vld [vmem:[%s4485_s3 + $0xa8] sm:$0xff]  }
 0x177   : > { %1428 = vst [vmem:[#allocation2 + $0x24] sm:$0xf] %v1412_v3  ;;  %v1154_v7 = vpop.f32.mrb[62].mxu0  ;;  %3337 = vmatprep.mubr.msk.bf16.mxu1 %vm4524_vm3, %v3558_v1  ;;  %3422 = vmatpush3.bf16.msra.mxu1 %v3538_v43  ;;  %v1418_v34 = vshll.u32 %v2978_v51, 16  ;;  %v1413_v10 = vrot.slane %v1408_v18, 4  ;;  %v1673_v58 = vshll.u32 %v4189_v42, 16 }
 0x178   : > { %v1417_v27 = vrot.slane %v1415_v60, 7  ;;  %v1451_v11 = vshrl.u32 %v2980_v0, 16  ;;  %v1186_v62 = vadd.f32 %v1154_v7, %v4088_v28  ;;  %v3304_v14 = vpop.f32.mrb[63].mxu0  ;;  %3423 = vmatprep.subr.bf16.mxu1 %v3558_v1  ;;  %v1209_v13 = vadd.f32 %v4099_v48, %v1185_v6 }
 0x179   : > { %3394 = vmatmul.mubr.bf16.gmra.mrb[84].mxu0 %v4189_v42  ;;  %v2069_v15 = vrot.slane %v4189_v42, 1  ;;  %v1454_v16 = vshll.u32 %v2980_v0, 16  ;;  %v1675_v24 = vrot.slane %v1673_v58, 1  ;;  %v1677_v60 = vshrl.u32 %v4189_v42, 16  ;;  %v3548_v42 = vld [vmem:[%s4485_s3 + $0xb8] sm:$0xff]  }
 0x17a   : > { %v1420_v29 = vor.u32 %v1418_v34, %v1417_v27  ;;  %v4204_v20 = vrot.slane %v1451_v11, 7  ;;  %v1210_v53 = vadd.f32 %v4099_v48, %v1186_v62  ;;  %3397 = vmatprep.mubr.msk.bf16.mxu0 %vm4524_vm3, %v3558_v1  ;;  %v1226_v28 = vmax.f32 %v1209_v13, 0.0 }
 0x17b   : > { %3424 = vmatpush3.bf16.msra.mxu1 %v3540_v17  ;;  %v4215_v55 = vsel %vm994_vm9, %v2067_v25, %v2069_v15  ;;  %v1449_v5 = vrot.slane %v1417_v27, 4  ;;  %v1676_v38 = vsel %vm4554_vm12, %v1671_v22, %v1675_v24  ;;  %v1679_v11 = vor.u32 %v1677_v60, %v1675_v24 }
 0x17c   : > { %v1421_v30 = vsel %vm3689_vm14, %v1413_v10, %v1420_v29  ;;  %1470 = vst [vmem:[#allocation2 + $0x28] sm:$0x8] %v1420_v29  ;;  %v1456_v18 = vor.u32 %v1454_v16, %v4204_v20  ;;  %v1227_v32 = vmax.f32 %v1210_v53, 0.0  ;;  %3425 = vmatprep.subr.bf16.mxu1 %v3558_v1  ;;  %v2981_v36 = vpack.c.bf16 %v1226_v28, %v1226_v28 }
 0x17d   : > { %v1430_v35 = vsel %vm3833_vm8, %v1421_v30, %v1429_v50  ;;  %v1159_v63 = vpop.f32.mrb[64].mxu0  ;;  %v1458_v0 = vrot.slane %v4204_v20, 4  ;;  %vm4557_vm8 = vmmov %vm4548_vm0  ;;  %vm4566_vm12 = vnez %v4504_v31 }
 0x17e   : > { %1431 = vst [vmem:[#allocation2 + $0x28] sm:$0x7] %v1430_v35  ;;  %v1457_v25 = vsel %vm3689_vm14, %v1449_v5, %v1456_v18  ;;  %v2983_v43 = vpack.c.bf16 %v1227_v32, %v1227_v32  ;;  %v1187_v45 = vadd.f32 %v1159_v63, %v4090_v21  ;;  %v3307_v47 = vpop.f32.mrb[65].mxu0  ;;  %3338 = vmatmul.mubr.bf16.gmra.mrb[44].mxu1 %v1676_v38  ;;  %v4227_v51 = vld [vmem:[#allocation2 + $0x20] sm:$0xff]   ;;  %v1460_v52 = vshrl.u32 %v2981_v36, 16 }
 0x17f   : > { %1471 = vst [vmem:[#allocation2 + $0x2c] sm:$0xf] %v1457_v25  ;;  %v1463_v19 = vshll.u32 %v2981_v36, 16  ;;  %v1162_v44 = vpop.f32.mrb[66].mxu0  ;;  %3341 = vmatprep.mubr.msk.bf16.mxu1 %vm4524_vm3, %v3558_v1  ;;  %3426 = vmatpush3.bf16.msra.mxu1 %v3542_v12  ;;  %v1681_v7 = vshll.u32 %v4227_v51, 16  ;;  %v2071_v14 = vrot.slane %v4227_v51, 1 }
 0x180   : > { %v1491_v23 = vshrl.u32 %v2983_v43, 16  ;;  %v1211_v9 = vadd.f32 %v4099_v48, %v1187_v45  ;;  %v1188_v21 = vadd.f32 %v1162_v44, %v4092_v26  ;;  %v3308_v3 = vpop.f32.mrb[67].mxu0  ;;  %3427 = vmatprep.subr.bf16.mxu1 %v3558_v1  ;;  %v1462_v4 = vrot.slane %v1460_v52, 7  ;;  %v1514_v45 = vld [vmem:[#allocation2 + $0x38] sm:$0xf] }
 0x181   : > { %v1511_v6 = vsel %vm3859_vm4, %v1463_v19, %v1510_v40  ;;  %3398 = vmatmul.mubr.bf16.gmra.mrb[88].mxu0 %v4227_v51  ;;  %v1494_v17 = vshll.u32 %v2983_v43, 16  ;;  %v1683_v62 = vrot.slane %v1681_v7, 1  ;;  %v2833_v10 = vrot.slane %v1460_v52, 11  ;;  %vm4558_vm4 = vmmov %vm4548_vm0 }
 0x182   : > { %1512 = vst [vmem:[#allocation2 + $0x30] sm:$0x8] %v1511_v6  ;;  %v1493_v46 = vrot.slane %v1491_v23, 7  ;;  %v1228_v27 = vmax.f32 %v1211_v9, 0.0  ;;  %v1212_v26 = vadd.f32 %v4099_v48, %v1188_v21  ;;  %3401 = vmatprep.mubr.msk.bf16.mxu0 %vm4524_vm3, %v3558_v1  ;;  %v1465_v34 = vor.u32 %v1463_v19, %v1462_v4 }
 0x183   : > { %3428 = vmatpush3.bf16.msra.mxu1 %v3544_v56  ;;  %v1684_v16 = vsel %vm4555_vm6, %v1679_v11, %v1683_v62  ;;  %v4257_v53 = vsel %vm994_vm9, %v2069_v15, %v2071_v14 }
 0x184   : > { %v1496_v13 = vor.u32 %v1494_v17, %v1493_v46  ;;  %v2984_v58 = vpack.c.bf16 %v1228_v27, %v1228_v27  ;;  %v1229_v29 = vmax.f32 %v1212_v26, 0.0  ;;  %3429 = vmatprep.subr.bf16.mxu1 %v3558_v1  ;;  %v1466_v50 = vsel %vm3689_vm14, %v1458_v0, %v1465_v34 }
 0x185   : > { %v1167_v20 = vpop.f32.mrb[68].mxu0  ;;  %1472 = vst [vmem:[#allocation2 + $0x30] sm:$0x7] %v1466_v50  ;;  %v1498_v40 = vrot.slane %v1493_v46, 4 }
 0x186   : > { %v1497_v28 = vsel %vm3689_vm14, %v2833_v10, %v1496_v13  ;;  %v1500_v22 = vshrl.u32 %v2984_v58, 16  ;;  %v2986_v24 = vpack.c.bf16 %v1229_v29, %v1229_v29  ;;  %v3311_v12 = vpop.f32.mrb[69].mxu0  ;;  %3342 = vmatmul.mubr.bf16.gmra.mrb[48].mxu1 %v1684_v16  ;;  %v3539_v30 = vld [vmem:[#allocation2 + $0x28] sm:$0xff]   ;;  %v1189_v5 = vadd.f32 %v1167_v20, %v4094_v41 }
 0x187   : > { %1513 = vst [vmem:[#allocation2 + $0x34] sm:$0xf] %v1497_v28  ;;  %v1170_v18 = vpop.f32.mrb[70].mxu0  ;;  %3345 = vmatprep.mubr.msk.bf16.mxu1 %vm4524_vm3, %v3558_v1  ;;  %3430 = vmatpush3.bf16.msra.mxu1 %v3547_v37  ;;  %v1503_v32 = vshll.u32 %v2984_v58, 16  ;;  %v1685_v41 = vshrl.u32 %v4227_v51, 16  ;;  %v1689_v38 = vshll.u32 %v3539_v30, 16 }
 0x188   : > { %v1502_v15 = vrot.slane %v1500_v22, 7  ;;  %v1533_v35 = vshrl.u32 %v2986_v24, 16  ;;  %v3312_v36 = vpop.f32.mrb[71].mxu0  ;;  %3431 = vmatprep.subr.bf16.mxu1 %v3558_v1  ;;  %v1213_v63 = vadd.f32 %v4099_v48, %v1189_v5  ;;  %v2073_v25 = vrot.slane %v3539_v30, 1 }
 0x189   : > { %3402 = vmatmul.mubr.bf16.gmra.mrb[92].mxu0 %v3539_v30  ;;  %v1536_v52 = vshll.u32 %v2986_v24, 16  ;;  %v1687_v44 = vor.u32 %v1685_v41, %v1683_v62  ;;  %v1691_v56 = vrot.slane %v1689_v38, 1  ;;  %v2837_v51 = vrot.slane %v1500_v22, 11  ;;  %v1586_v22 = vld [vmem:[#allocation2 + $0x44] sm:$0x1] }
 0x18a   : > { %v1505_v43 = vor.u32 %v1503_v32, %v1502_v15  ;;  %v1535_v47 = vrot.slane %v1533_v35, 7  ;;  %3405 = vmatprep.mubr.msk.bf16.mxu0 %vm4524_vm3, %v3558_v1  ;;  %v1230_v19 = vmax.f32 %v1213_v63, 0.0  ;;  %v4273_v23 = vsel %vm994_vm9, %v2071_v14, %v2073_v25 }
 0x18b   : > { %3432 = vmatpush3.bf16.msra.mxu1 %v3548_v42  ;;  %v1692_v60 = vsel %vm4556_vm10, %v1687_v44, %v1691_v56  ;;  %v1693_v7 = vshrl.u32 %v3539_v30, 16 }
 0x18c   : > { %v1506_v48 = vsel %vm3689_vm14, %v1498_v40, %v1505_v43  ;;  %v1538_v9 = vor.u32 %v1536_v52, %v1535_v47  ;;  %v2987_v3 = vpack.c.bf16 %v1230_v19, %v1230_v19  ;;  %v1540_v62 = vrot.slane %v1535_v47, 4 }
 0x18d   : > { %v1515_v21 = vsel %vm3890_vm15, %v1506_v48, %v1514_v45  ;;  %v1695_v26 = vor.u32 %v1693_v7, %v1691_v56  ;;  %vm4559_vm15 = vmmov %vm4548_vm0  ;;  %vm4561_vm0 = vcmask 1041408  }
 0x18e   : > { %1516 = vst [vmem:[#allocation2 + $0x38] sm:$0xf] %v1515_v21  ;;  %v1539_v0 = vsel %vm3689_vm14, %v2837_v51, %v1538_v9  ;;  %3346 = vmatmul.mubr.bf16.gmra.mrb[52].mxu1 %v1692_v60  ;;  %v3541_v4 = vld [vmem:[#allocation2 + $0x30] sm:$0xff]   ;;  %v1542_v6 = vshrl.u32 %v2987_v3, 16  ;;  %v1545_v2 = vshll.u32 %v2987_v3, 16 }
 0x18f   : > { %1551 = vst [vmem:[#allocation2 + $0x3c] sm:$0xf] %v1539_v0  ;;  %3349 = vmatprep.mubr.msk.bf16.mxu1 %vm4524_vm3, %v3558_v1  ;;  %v1697_v46 = vshll.u32 %v3541_v4, 16  ;;  %v2075_v17 = vrot.slane %v3541_v4, 1  ;;  %v1701_v58 = vshrl.u32 %v3541_v4, 16 }
 0x190   : > { %v1544_v27 = vrot.slane %v1542_v6, 7 }
 0x191   : > { %3406 = vmatmul.mubr.bf16.gmra.mrb[96].mxu0 %v3541_v4  ;;  %v1699_v34 = vrot.slane %v1697_v46, 1  ;;  %v2076_v11 = vsel %vm994_vm9, %v2073_v25, %v2075_v17 }
 0x192   : > { %3409 = vmatprep.mubr.msk.bf16.mxu0 %vm4524_vm3, %v3558_v1  ;;  %v1547_v37 = vor.u32 %v1545_v2, %v1544_v27 }
 0x193   : > { %v1700_v14 = vsel %vm4557_vm8, %v1695_v26, %v1699_v34  ;;  %v1703_v20 = vor.u32 %v1701_v58, %v1699_v34 }
 0x194   : > { %v1548_v10 = vsel %vm3689_vm14, %v1540_v62, %v1547_v37 }
 0x195   : > { %1552 = vst [vmem:[#allocation2 + $0x40] sm:$0xf] %v1548_v10 }
 0x196   : > { %3350 = vmatmul.mubr.bf16.gmra.mrb[56].mxu1 %v1700_v14  ;;  %v3543_v13 = vld [vmem:[#allocation2 + $0x38] sm:$0xff]  }
 0x197   : > { %3353 = vmatprep.mubr.msk.bf16.mxu1 %vm4524_vm3, %v3558_v1  ;;  %v1705_v29 = vshll.u32 %v3543_v13, 16  ;;  %v2077_v50 = vrot.slane %v3543_v13, 1  ;;  %v1709_v18 = vshrl.u32 %v3543_v13, 16 }
 0x199   : > { %3410 = vmatmul.mubr.bf16.gmra.mrb[100].mxu0 %v3543_v13  ;;  %v1707_v16 = vrot.slane %v1705_v29, 1  ;;  %v2078_v28 = vsel %vm994_vm9, %v2075_v17, %v2077_v50 }
 0x19a   : > { %3413 = vmatprep.mubr.msk.bf16.mxu0 %vm4524_vm3, %v3558_v1 }
 0x19b   : > { %v1708_v24 = vsel %vm4558_vm4, %v1703_v20, %v1707_v16  ;;  %v1711_v32 = vor.u32 %v1709_v18, %v1707_v16 }
 0x19c   : > { %v1569_v12 = vld [vmem:[#allocation2 + $0x40] sm:$0xf] }
 0x19d   : > { %v2862_v30 = vcombine.low %v1569_v12, %v1586_v22  ;;  %v2871_v5 = vcombine.low %v1569_v12, %v1569_v12 }
 0x19e   : > { %3354 = vmatmul.mubr.bf16.gmra.mrb[60].mxu1 %v1708_v24 }
 0x19f   : > { %3357 = vmatprep.mubr.msk.bf16.mxu1 %vm4524_vm3, %v3558_v1  ;;  %v1713_v42 = vshll.u32 %v2862_v30, 16  ;;  %v2079_v15 = vrot.slane %v2862_v30, 1  ;;  %v1717_v41 = vshrl.u32 %v2862_v30, 16 }
 0x1a1   : > { %3414 = vmatmul.mubr.bf16.gmra.mrb[104].mxu0 %v2871_v5  ;;  %v1715_v35 = vrot.slane %v1713_v42, 1  ;;  %v2080_v36 = vsel %vm994_vm9, %v2077_v50, %v2079_v15 }
 0x1a3   : > { %v1716_v63 = vsel %vm4559_vm15, %v1711_v32, %v1715_v35  ;;  %v1719_v38 = vor.u32 %v1717_v41, %v1715_v35 }
 0x1a6   : > { %3358 = vmatmul.mubr.bf16.gmra.mrb[64].mxu1 %v1716_v63 }
 0x1a7   : > { %3361 = vmatprep.mubr.msk.bf16.mxu1 %vm4524_vm3, %v3558_v1 }
 0x1ae   : > { %3362 = vmatmul.mubr.bf16.gmra.mrb[68].mxu1 %v1719_v38 }
 0x1af   : > { %3433 = vmatprep.mubr.msk.bf16.mxu1 %vm4524_vm3, %v3558_v1 }
 0x1b6   : > { %3434 = vmatmul.mubr.bf16.vlgmr.msra.gmra.mrb[72].mxu1 %v4148_v59 }
 0x1b7   : > { %3437 = vmatprep.mubr.msk.bf16.mxu1 %vm4524_vm3, %v3558_v1 }
 0x1be   : > { %3438 = vmatmul.mubr.bf16.gmra.mrb[76].mxu1 %v4179_v39 }
 0x1bf   : > { %3441 = vmatprep.mubr.msk.bf16.mxu1 %vm4524_vm3, %v3558_v1 }
 0x1c6   : > { %3442 = vmatmul.mubr.bf16.gmra.mrb[80].mxu1 %v4215_v55 }
 0x1c7   : > { %3445 = vmatprep.mubr.msk.bf16.mxu1 %vm4524_vm3, %v3558_v1 }
 0x1ce   : > { %3446 = vmatmul.mubr.bf16.gmra.mrb[84].mxu1 %v4257_v53 }
 0x1cf   : > { %3449 = vmatprep.mubr.msk.bf16.mxu1 %vm4524_vm3, %v3558_v1 }
 0x1d6   : > { %3450 = vmatmul.mubr.bf16.gmra.mrb[88].mxu1 %v4273_v23 }
 0x1d7   : > { %3453 = vmatprep.mubr.msk.bf16.mxu1 %vm4524_vm3, %v3558_v1 }
 0x1de   : > { %3454 = vmatmul.mubr.bf16.gmra.mrb[92].mxu1 %v2076_v11 }
 0x1df   : > { %3457 = vmatprep.mubr.msk.bf16.mxu1 %vm4524_vm3, %v3558_v1 }
 0x1e6   : > { %3458 = vmatmul.mubr.bf16.gmra.mrb[96].mxu1 %v2078_v28 }
 0x1e7   : > { %3461 = vmatprep.mubr.msk.bf16.mxu1 %vm4524_vm3, %v3558_v1 }
 0x1ee   : > { %3462 = vmatmul.mubr.bf16.gmra.mrb[100].mxu1 %v2080_v36 }
 0x1ef   : > { %3465 = vmatprep.mubr.msk.bf16.mxu1 %vm4524_vm3, %v3558_v1  ;;  %vm4560_vm3 = vcmask 1040384  }
 0x1f6   : > { %3466 = vmatmul.mubr.bf16.gmra.mrb[104].mxu1 %v2079_v15 }
 0x234   : > { %v1973_v59 = vpop.f32.mrb[72].mxu0 }
 0x235   : > { %v3383_v39 = vpop.f32.mrb[73].mxu0 }
 0x236   : > { %v1976_v55 = vpop.f32.mrb[74].mxu0 }
 0x237   : > { %v3384_v53 = vpop.f32.mrb[75].mxu0 }
 0x23c   : > { %v1981_v25 = vpop.f32.mrb[76].mxu0 }
 0x23d   : > { %v3387_v40 = vpop.f32.mrb[77].mxu0 }
 0x23e   : > { %v1984_v43 = vpop.f32.mrb[78].mxu0 }
 0x23f   : > { %v3388_v45 = vpop.f32.mrb[79].mxu0 }
 0x241   : > { %v1811_v47 = vpop.f32.mrb[36].mxu1 }
 0x242   : > { %v4325_v52 = vadd.f32 %v1973_v59, %v1811_v47  ;;  %v3331_v19 = vpop.f32.mrb[37].mxu1 }
 0x243   : > { %v1814_v44 = vpop.f32.mrb[38].mxu1 }
 0x244   : > { %v4327_v56 = vadd.f32 %v1976_v55, %v1814_v44  ;;  %v3332_v23 = vpop.f32.mrb[39].mxu1  ;;  %v1989_v48 = vpop.f32.mrb[80].mxu0 }
 0x245   : > { %v3391_v51 = vpop.f32.mrb[81].mxu0 }
 0x246   : > { %v1992_v1 = vpop.f32.mrb[82].mxu0 }
 0x247   : > { %v3392_v9 = vpop.f32.mrb[83].mxu0 }
 0x249   : > { %v1819_v21 = vpop.f32.mrb[40].mxu1 }
 0x24a   : > { %v4329_v3 = vadd.f32 %v1981_v25, %v1819_v21  ;;  %v3335_v60 = vpop.f32.mrb[41].mxu1 }
 0x24b   : > { %v1822_v0 = vpop.f32.mrb[42].mxu1 }
 0x24c   : > { %v4331_v4 = vadd.f32 %v1984_v43, %v1822_v0  ;;  %v3336_v6 = vpop.f32.mrb[43].mxu1  ;;  %v1997_v7 = vpop.f32.mrb[84].mxu0 }
 0x24d   : > { %v3395_v46 = vpop.f32.mrb[85].mxu0 }
 0x24e   : > { %v2000_v17 = vpop.f32.mrb[86].mxu0 }
 0x24f   : > { %v3396_v27 = vpop.f32.mrb[87].mxu0 }
 0x251   : > { %v1827_v2 = vpop.f32.mrb[44].mxu1 }
 0x252   : > { %v4333_v26 = vadd.f32 %v1989_v48, %v1827_v2  ;;  %v3339_v34 = vpop.f32.mrb[45].mxu1 }
 0x253   : > { %v1830_v11 = vpop.f32.mrb[46].mxu1 }
 0x254   : > { %v4335_v62 = vadd.f32 %v1992_v1, %v1830_v11  ;;  %v3340_v37 = vpop.f32.mrb[47].mxu1  ;;  %v2005_v14 = vpop.f32.mrb[88].mxu0 }
 0x255   : > { %v3399_v10 = vpop.f32.mrb[89].mxu0 }
 0x256   : > { %v2008_v13 = vpop.f32.mrb[90].mxu0 }
 0x257   : > { %v3400_v58 = vpop.f32.mrb[91].mxu0 }
 0x259   : > { %v1835_v29 = vpop.f32.mrb[48].mxu1 }
 0x25a   : > { %v4337_v50 = vadd.f32 %v1997_v7, %v1835_v29  ;;  %v3343_v20 = vpop.f32.mrb[49].mxu1  ;;  %v3012_v29 = vld [vmem:[%s3646_s17] sm:$0xff]  }
 0x25b   : > { %v1838_v16 = vpop.f32.mrb[50].mxu1 }
 0x25c   : > { %v4339_v28 = vadd.f32 %v2000_v17, %v1838_v16  ;;  %v3344_v22 = vpop.f32.mrb[51].mxu1  ;;  %v2013_v24 = vpop.f32.mrb[92].mxu0  ;;  %v4363_v16 = vld [vmem:[%s4486_s4] ss:$0 sm:$0xff] }
 0x25d   : > { %v3403_v12 = vpop.f32.mrb[93].mxu0 }
 0x25e   : > { %v2016_v30 = vpop.f32.mrb[94].mxu0 }
 0x25f   : > { %v3404_v5 = vpop.f32.mrb[95].mxu0 }
 0x261   : > { %v1843_v18 = vpop.f32.mrb[52].mxu1 }
 0x262   : > { %v4341_v42 = vadd.f32 %v2005_v14, %v1843_v18  ;;  %v3347_v15 = vpop.f32.mrb[53].mxu1 }
 0x263   : > { %v1846_v32 = vpop.f32.mrb[54].mxu1 }
 0x264   : > { %v4343_v35 = vadd.f32 %v2008_v13, %v1846_v32  ;;  %v3348_v36 = vpop.f32.mrb[55].mxu1  ;;  %v2021_v63 = vpop.f32.mrb[96].mxu0  ;;  %v3014_v32 = vunpack.c.h.bf16 %v3012_v29 }
 0x265   : > { %v3407_v41 = vpop.f32.mrb[97].mxu0 }
 0x266   : > { %v2024_v38 = vpop.f32.mrb[98].mxu0 }
 0x267   : > { %v3408_v59 = vpop.f32.mrb[99].mxu0 }
 0x269   : > { %v1851_v39 = vpop.f32.mrb[56].mxu1 }
 0x26a   : > { %v4345_v55 = vadd.f32 %v2013_v24, %v1851_v39  ;;  %v3351_v53 = vpop.f32.mrb[57].mxu1  ;;  %v3013_v24 = vunpack.c.l.bf16 %v3012_v29 }
 0x26b   : > { %v1854_v25 = vpop.f32.mrb[58].mxu1 }
 0x26c   : > { %v4347_v40 = vadd.f32 %v2016_v30, %v1854_v25  ;;  %v3352_v43 = vpop.f32.mrb[59].mxu1  ;;  %v2029_v45 = vpop.f32.mrb[100].mxu0  ;;  %v3048_v30 = vld [vmem:[%s3646_s17 + $0x8] sm:$0xff]  }
 0x26d   : > { %v3411_v47 = vpop.f32.mrb[101].mxu0  ;;  %v3023_v41 = vunpack.c.h.bf16 %v3048_v30 }
 0x26e   : > { %v2032_v19 = vpop.f32.mrb[102].mxu0 }
 0x26f   : > { %v3412_v44 = vpop.f32.mrb[103].mxu0  ;;  %v2309_v25 = vrot.slane %v3023_v41, 7 }
 0x270   : > { %v3049_v44 = vld [vmem:[%s3646_s17 + $0x10] sm:$0xff]  }
 0x271   : > { %v1859_v23 = vpop.f32.mrb[60].mxu1 }
 0x272   : > { %v4349_v48 = vadd.f32 %v2021_v63, %v1859_v23  ;;  %v3355_v51 = vpop.f32.mrb[61].mxu1  ;;  %v3022_v63 = vunpack.c.l.bf16 %v3048_v30 }
 0x273   : > { %v1862_v1 = vpop.f32.mrb[62].mxu1 }
 0x274   : > { %v4351_v9 = vadd.f32 %v2024_v38, %v1862_v1  ;;  %v3356_v21 = vpop.f32.mrb[63].mxu1  ;;  %v2037_v60 = vpop.f32.mrb[104].mxu0 }
 0x275   : > { %v3415_v0 = vpop.f32.mrb[105].mxu0 }
 0x276   : > { %v2040_v6 = vpop.f32.mrb[106].mxu0  ;;  %v3027_v0 = vunpack.c.h.bf16 %v3049_v44 }
 0x277   : > { %v3416_v7 = vpop.f32.mrb[107].mxu0 }
 0x279   : > { %v1867_v46 = vpop.f32.mrb[64].mxu1 }
 0x27a   : > { %v4353_v17 = vadd.f32 %v2029_v45, %v1867_v46  ;;  %v3359_v27 = vpop.f32.mrb[65].mxu1 }
 0x27b   : > { %v1870_v2 = vpop.f32.mrb[66].mxu1 }
 0x27c   : > { %v4355_v34 = vadd.f32 %v2032_v19, %v1870_v2  ;;  %v3360_v11 = vpop.f32.mrb[67].mxu1  ;;  %v3050_v2 = vld [vmem:[%s3646_s17 + $0x18] sm:$0xff]  }
 0x281   : > { %v1875_v37 = vpop.f32.mrb[68].mxu1 }
 0x282   : > { %v4357_v14 = vadd.f32 %v2037_v60, %v1875_v37  ;;  %v3363_v10 = vpop.f32.mrb[69].mxu1 }
 0x283   : > { %v1878_v13 = vpop.f32.mrb[70].mxu1  ;;  %v2367_v10 = vrot.slane %v3027_v0, 6 }
 0x284   : > { %v3364_v58 = vpop.f32.mrb[71].mxu1 }
 0x289   : > { %v2172_v20 = vpop.f32.mrb[72].mxu1 }
 0x28a   : > { %v2242_v22 = vadd.f32 %v2172_v20, %v4325_v52  ;;  %v3435_v12 = vpop.f32.mrb[73].mxu1  ;;  %v2308_v52 = vrot.slane %v3022_v63, 7 }
 0x28b   : > { %v2175_v5 = vpop.f32.mrb[74].mxu1 }
 0x28c   : > { %v2266_v18 = vadd.f32 %v4363_v16, %v2242_v22  ;;  %v2243_v15 = vadd.f32 %v2175_v5, %v4327_v56  ;;  %v3436_v36 = vpop.f32.mrb[75].mxu1  ;;  %v2310_v60 = vsel %vm4560_vm3, %v2308_v52, %v2309_v25  ;;  %v3030_v22 = vunpack.c.l.bf16 %v3050_v2 }
 0x28e   : > { %v2287_v38 = vadd.f32 %v3013_v24, %v2266_v18  ;;  %v2267_v59 = vadd.f32 %v4363_v16, %v2243_v15  ;;  %v3031_v24 = vunpack.c.h.bf16 %v3050_v2 }
 0x290   : > { %v2288_v39 = vadd.f32 %v3014_v32, %v2267_v59  ;;  %v2289_v43 = vmax.f32 %v2287_v38, 0.0 }
 0x291   : > { %v2180_v53 = vpop.f32.mrb[76].mxu1 }
 0x292   : > { %v2290_v45 = vmax.f32 %v2288_v39, 0.0  ;;  %v2244_v47 = vadd.f32 %v2180_v53, %v4329_v3  ;;  %v3439_v19 = vpop.f32.mrb[77].mxu1  ;;  %v3026_v3 = vunpack.c.l.bf16 %v3049_v44  ;;  %v4391_v44 = vrot.slane %v3031_v24, 5 }
 0x293   : > { %v2183_v56 = vpop.f32.mrb[78].mxu1 }
 0x294   : > { %v3018_v23 = vpack.c.bf16 %v2290_v45, %v2289_v43  ;;  %v2268_v51 = vadd.f32 %v4363_v16, %v2244_v47  ;;  %v2245_v1 = vadd.f32 %v2183_v56, %v4331_v4  ;;  %v3440_v21 = vpop.f32.mrb[79].mxu1  ;;  %v2366_v37 = vrot.slane %v3026_v3, 6 }
 0x295   : > { %v2407_v43 = vrot.slane %v3030_v22, 5 }
 0x296   : > { %3019 = vst [vmem:[%s4377_s19] sm:$0xff] %v3018_v23   ;;  %v2314_v6 = vadd.f32 %v2308_v52, %v2268_v51  ;;  %v2269_v7 = vadd.f32 %v4363_v16, %v2245_v1  ;;  %v2368_v36 = vsel %vm4561_vm0, %v2366_v37, %v2367_v10 }
 0x298   : > { %v2317_v46 = vmax.f32 %v2314_v6, 0.0  ;;  %v2315_v27 = vadd.f32 %v2310_v60, %v2269_v7 }
 0x299   : > { %v2188_v11 = vpop.f32.mrb[80].mxu1 }
 0x29a   : > { %v2990_v13 = vpack.c.bf16 %v2317_v46, %v2317_v46  ;;  %v2318_v58 = vmax.f32 %v2315_v27, 0.0  ;;  %v2246_v29 = vadd.f32 %v2188_v11, %v4333_v26  ;;  %v3443_v4 = vpop.f32.mrb[81].mxu1  ;;  %v3051_v26 = vld [vmem:[%s3646_s17 + $0x20] sm:$0xff]  }
 0x29b   : > { %v2191_v20 = vpop.f32.mrb[82].mxu1  ;;  %v3034_v1 = vunpack.c.l.bf16 %v3051_v26 }
 0x29c   : > { %v2331_v12 = vshrl.u32 %v2990_v13, 16  ;;  %v2334_v30 = vshll.u32 %v2990_v13, 16  ;;  %v2991_v5 = vpack.c.bf16 %v2318_v58, %v2318_v58  ;;  %v2270_v18 = vadd.f32 %v4363_v16, %v2246_v29  ;;  %v3444_v15 = vpop.f32.mrb[83].mxu1 }
 0x29d   : > { %v2247_v32 = vadd.f32 %v2191_v20, %v4335_v62  ;;  %v2469_v4 = vrot.slane %v3034_v1, 4 }
 0x29e   : > { %v2333_v63 = vrot.slane %v2331_v12, 4  ;;  %v2336_v41 = vrot.slane %v2334_v30, 5  ;;  %v2340_v38 = vshll.u32 %v2991_v5, 16  ;;  %v2344_v59 = vshrl.u32 %v2991_v5, 16  ;;  %v3052_v30 = vld [vmem:[%s3646_s17 + $0x28] sm:$0xff]  }
 0x29f   : > { %v2316_v39 = vadd.f32 %v2309_v25, %v2270_v18  ;;  %v2372_v53 = vadd.f32 %v2366_v37, %v2270_v18  ;;  %v2271_v52 = vadd.f32 %v4363_v16, %v2247_v32  ;;  %v3035_v25 = vunpack.c.h.bf16 %v3051_v26 }
 0x2a0   : > { %v2337_v45 = vor.u32 %v2336_v41, %v2333_v63  ;;  %v2342_v47 = vrot.slane %v2340_v38, 5  ;;  %v2346_v19 = vrot.slane %v2344_v59, 4  ;;  %v3038_v59 = vunpack.c.l.bf16 %v3052_v30 }
 0x2a1   : > { %v2319_v56 = vmax.f32 %v2316_v39, 0.0  ;;  %v2375_v23 = vmax.f32 %v2372_v53, 0.0  ;;  %v2373_v62 = vadd.f32 %v2368_v36, %v2271_v52  ;;  %v2196_v51 = vpop.f32.mrb[84].mxu1  ;;  %v4402_v12 = vrot.slane %v3035_v25, 4 }
 0x2a2   : > { %v2338_v21 = vrot.slane %v2337_v45, 4  ;;  %v2248_v60 = vadd.f32 %v2196_v51, %v4337_v50  ;;  %v3447_v3 = vpop.f32.mrb[85].mxu1  ;;  %v2347_v0 = vor.u32 %v2346_v19, %v2342_v47  ;;  %v2409_v50 = vsel %vm4562_vm2, %v2407_v43, %v4391_v44 }
 0x2a3   : > { %v2992_v6 = vpack.c.bf16 %v2319_v56, %v2319_v56  ;;  %v2993_v7 = vpack.c.bf16 %v2375_v23, %v2375_v23  ;;  %v2376_v46 = vmax.f32 %v2373_v62, 0.0  ;;  %v2199_v27 = vpop.f32.mrb[86].mxu1  ;;  %v3039_v26 = vunpack.c.h.bf16 %v3052_v30 }
 0x2a4   : > { %v2343_v2 = vsel %vm3867_vm1, %v2338_v21, %v2342_v47  ;;  %v2272_v11 = vadd.f32 %v4363_v16, %v2248_v60  ;;  %v2249_v37 = vadd.f32 %v2199_v27, %v4339_v28  ;;  %v3448_v13 = vpop.f32.mrb[87].mxu1  ;;  %v2348_v5 = vrot.slane %v2347_v0, 4 }
 0x2a5   : > { %2913 = vst [vmem:[%s4377_s19 + $0x8] sm:$0xf] %v2343_v2  ;;  %v2350_v58 = vshll.u32 %v2992_v6, 16  ;;  %v2994_v29 = vpack.c.bf16 %v2376_v46, %v2376_v46  ;;  %v2920_v28 = vrot.slane %v2993_v7, 9  ;;  %v2471_v49 = vsel %vm4563_vm7, %v2469_v4, %v4402_v12 }
 0x2a6   : > { %v2374_v20 = vadd.f32 %v2367_v10, %v2272_v11  ;;  %v2413_v22 = vadd.f32 %v2407_v43, %v2272_v11  ;;  %v2273_v24 = vadd.f32 %v4363_v16, %v2249_v37  ;;  %v2510_v3 = vrot.slane %v3038_v59, 3 }
 0x2a7   : > { %v2352_v18 = vrot.slane %v2350_v58, 5  ;;  %v2390_v15 = vrot.slane %v2994_v29, 5  ;;  %v4416_v25 = vrot.slane %v3039_v26, 3 }
 0x2a8   : > { %v2377_v32 = vmax.f32 %v2374_v20, 0.0  ;;  %v2416_v36 = vmax.f32 %v2413_v22, 0.0  ;;  %v2414_v63 = vadd.f32 %v2409_v50, %v2273_v24 }
 0x2a9   : > { %v2353_v41 = vsel %vm3867_vm1, %v2348_v5, %v2352_v18  ;;  %v2391_v10 = vsel %vm3801_vm11, %v2920_v28, %v2390_v15  ;;  %v2204_v38 = vpop.f32.mrb[88].mxu1  ;;  %v2392_v47 = vrot.slane %v2390_v15, 4  ;;  %vm2509_vm1 = vcmask 1044480  }
 0x2aa   : > { %2914 = vst [vmem:[%s4377_s19 + $0xc] sm:$0xf] %v2353_v41  ;;  %2921 = vst [vmem:[%s4377_s19 + $0x10] sm:$0xf] %v2391_v10  ;;  %v2995_v39 = vpack.c.bf16 %v2377_v32, %v2377_v32  ;;  %v2996_v53 = vpack.c.bf16 %v2416_v36, %v2416_v36  ;;  %v2417_v52 = vmax.f32 %v2414_v63, 0.0  ;;  %v2250_v43 = vadd.f32 %v2204_v38, %v4341_v42  ;;  %v3451_v45 = vpop.f32.mrb[89].mxu1 }
 0x2ab   : > { %v2207_v19 = vpop.f32.mrb[90].mxu1  ;;  %v3053_v42 = vld [vmem:[%s3646_s17 + $0x30] sm:$0xff]   ;;  %v2512_v41 = vsel %vm2509_vm1, %v2510_v3, %v4416_v25  ;;  %v3054_v45 = vld [vmem:[%s3646_s17 + $0x38] sm:$0xff]  }
 0x2ac   : > { %v2393_v56 = vrot.slane %v2995_v39, 5  ;;  %v2430_v23 = vshrl.u32 %v2996_v53, 16  ;;  %v2433_v62 = vshll.u32 %v2996_v53, 16  ;;  %v2997_v51 = vpack.c.bf16 %v2417_v52, %v2417_v52  ;;  %v3452_v1 = vpop.f32.mrb[91].mxu1 }
 0x2ad   : > { %v2274_v21 = vadd.f32 %v4363_v16, %v2250_v43  ;;  %v2251_v60 = vadd.f32 %v2207_v19, %v4343_v35  ;;  %v3042_v35 = vunpack.c.l.bf16 %v3053_v42  ;;  %v3043_v18 = vunpack.c.h.bf16 %v3053_v42 }
 0x2ae   : > { %v2394_v0 = vsel %vm3801_vm11, %v2392_v47, %v2393_v56  ;;  %v2432_v6 = vrot.slane %v2430_v23, 5  ;;  %v2435_v7 = vrot.slane %v2433_v62, 6  ;;  %v2439_v46 = vshrl.u32 %v2997_v51, 16 }
 0x2af   : > { %2922 = vst [vmem:[%s4377_s19 + $0x14] sm:$0xf] %v2394_v0  ;;  %v2442_v27 = vshll.u32 %v2997_v51, 16  ;;  %v2415_v2 = vadd.f32 %v4391_v44, %v2274_v21  ;;  %v2475_v11 = vadd.f32 %v2469_v4, %v2274_v21  ;;  %v2275_v37 = vadd.f32 %v4363_v16, %v2251_v60 }
 0x2b0   : > { %v2436_v13 = vor.u32 %v2435_v7, %v2432_v6  ;;  %v2441_v58 = vrot.slane %v2439_v46, 5  ;;  %v2572_v26 = vrot.slane %v3042_v35, 2  ;;  %v4433_v43 = vrot.slane %v3043_v18, 2 }
 0x2b1   : > { %v2444_v29 = vrot.slane %v2442_v27, 6  ;;  %v2418_v50 = vmax.f32 %v2415_v2, 0.0  ;;  %v2478_v20 = vmax.f32 %v2475_v11, 0.0  ;;  %v2476_v22 = vadd.f32 %v2471_v49, %v2275_v37  ;;  %v2212_v54 = vpop.f32.mrb[92].mxu1 }
 0x2b2   : > { %v2437_v24 = vrot.slane %v2436_v13, 4  ;;  %v2252_v30 = vadd.f32 %v2212_v54, %v4345_v55  ;;  %v3455_v5 = vpop.f32.mrb[93].mxu1  ;;  %vm2571_vm11 = vcmask 1045504   ;;  %v3047_v7 = vunpack.c.h.bf16 %v3054_v45 }
 0x2b3   : > { %v2445_v28 = vor.u32 %v2444_v29, %v2441_v58  ;;  %v2998_v44 = vpack.c.bf16 %v2418_v50, %v2418_v50  ;;  %v2479_v4 = vmax.f32 %v2476_v22, 0.0  ;;  %v2215_v15 = vpop.f32.mrb[94].mxu1  ;;  %v2999_v32 = vpack.c.bf16 %v2478_v20, %v2478_v20 }
 0x2b4   : > { %v2276_v36 = vadd.f32 %v4363_v16, %v2252_v30  ;;  %v2253_v63 = vadd.f32 %v2215_v15, %v4347_v40  ;;  %v3456_v10 = vpop.f32.mrb[95].mxu1  ;;  %v2574_v57 = vsel %vm2571_vm11, %v2572_v26, %v4433_v43 }
 0x2b5   : > { %v2446_v55 = vsel %vm3807_vm13, %v2437_v24, %v2445_v28  ;;  %v2449_v38 = vshrl.u32 %v2998_v44, 16  ;;  %v2452_v59 = vshll.u32 %v2998_v44, 16  ;;  %v3000_v39 = vpack.c.bf16 %v2479_v4, %v2479_v4 }
 0x2b6   : > { %2928 = vst [vmem:[%s4377_s19 + $0x18] sm:$0xf] %v2446_v55  ;;  %v2477_v53 = vadd.f32 %v4402_v12, %v2276_v36  ;;  %v2516_v52 = vadd.f32 %v2510_v3, %v2276_v36  ;;  %v2277_v19 = vadd.f32 %v4363_v16, %v2253_v63  ;;  %v2935_v49 = vrot.slane %v2999_v32, 10 }
 0x2b7   : > { %v2451_v47 = vrot.slane %v2449_v38, 5  ;;  %v2454_v40 = vrot.slane %v2452_v59, 6  ;;  %v2493_v56 = vrot.slane %v3000_v39, 6  ;;  %v2447_v51 = vrot.slane %v2445_v28, 4 }
 0x2b8   : > { %v2480_v23 = vmax.f32 %v2477_v53, 0.0  ;;  %v2519_v62 = vmax.f32 %v2516_v52, 0.0  ;;  %v2517_v21 = vadd.f32 %v2512_v41, %v2277_v19  ;;  %v3046_v12 = vunpack.c.l.bf16 %v3054_v45 }
 0x2b9   : > { %v2455_v1 = vor.u32 %v2454_v40, %v2451_v47  ;;  %v2220_v60 = vpop.f32.mrb[96].mxu1  ;;  %v2494_v3 = vsel %vm4564_vm5, %v2935_v49, %v2493_v56  ;;  %v2495_v27 = vrot.slane %v2493_v56, 4  ;;  %v2614_v32 = vrot.slane %v3047_v7, 1 }
 0x2ba   : > { %v3001_v42 = vpack.c.bf16 %v2480_v23, %v2480_v23  ;;  %v3002_v0 = vpack.c.bf16 %v2519_v62, %v2519_v62  ;;  %v3459_v6 = vpop.f32.mrb[97].mxu1  ;;  %2936 = vst [vmem:[%s4377_s19 + $0x20] sm:$0xf] %v2494_v3  ;;  %v2520_v2 = vmax.f32 %v2517_v21, 0.0  ;;  %v2254_v11 = vadd.f32 %v2220_v60, %v4349_v48 }
 0x2bb   : > { %v2456_v46 = vsel %vm3807_vm13, %v2447_v51, %v2455_v1  ;;  %v2223_v37 = vpop.f32.mrb[98].mxu1  ;;  %v2613_v15 = vrot.slane %v3046_v12, 1  ;;  %vm4565_vm13 = vnez %v4516_v8 }
 0x2bc   : > { %2929 = vst [vmem:[%s4377_s19 + $0x1c] sm:$0xf] %v2456_v46  ;;  %v2496_v13 = vrot.slane %v3001_v42, 6  ;;  %v2533_v58 = vshrl.u32 %v3002_v0, 16  ;;  %v2536_v35 = vshll.u32 %v3002_v0, 16  ;;  %v2255_v29 = vadd.f32 %v2223_v37, %v4351_v9  ;;  %v3460_v50 = vpop.f32.mrb[99].mxu1 }
 0x2bd   : > { %v3003_v20 = vpack.c.bf16 %v2520_v2, %v2520_v2  ;;  %v2278_v22 = vadd.f32 %v4363_v16, %v2254_v11  ;;  %v2615_v62 = vsel %vm994_vm9, %v2613_v15, %v2614_v32 }
 0x2be   : > { %v2497_v54 = vsel %vm4564_vm5, %v2495_v27, %v2496_v13  ;;  %v2535_v24 = vrot.slane %v2533_v58, 6  ;;  %v2538_v30 = vrot.slane %v2536_v35, 7  ;;  %v2279_v48 = vadd.f32 %v4363_v16, %v2255_v29 }
 0x2bf   : > { %2937 = vst [vmem:[%s4377_s19 + $0x24] sm:$0xf] %v2497_v54  ;;  %v2542_v5 = vshrl.u32 %v3003_v20, 16  ;;  %v2545_v18 = vshll.u32 %v3003_v20, 16  ;;  %v2518_v28 = vadd.f32 %v4416_v25, %v2278_v22  ;;  %v2578_v9 = vadd.f32 %v2572_v26, %v2278_v22 }
 0x2c0   : > { %v2539_v44 = vor.u32 %v2538_v30, %v2535_v24  ;;  %v2579_v4 = vadd.f32 %v2574_v57, %v2279_v48 }
 0x2c1   : > { %v2544_v36 = vrot.slane %v2542_v5, 6  ;;  %v2547_v63 = vrot.slane %v2545_v18, 7  ;;  %v2521_v41 = vmax.f32 %v2518_v28, 0.0  ;;  %v2581_v10 = vmax.f32 %v2578_v9, 0.0  ;;  %v2228_v61 = vpop.f32.mrb[100].mxu1 }
 0x2c2   : > { %v2540_v55 = vrot.slane %v2539_v44, 4  ;;  %v2582_v38 = vmax.f32 %v2579_v4, 0.0  ;;  %v2256_v59 = vadd.f32 %v2228_v61, %v4353_v17  ;;  %v3463_v39 = vpop.f32.mrb[101].mxu1 }
 0x2c3   : > { %v2548_v53 = vor.u32 %v2547_v63, %v2544_v36  ;;  %v3004_v52 = vpack.c.bf16 %v2521_v41, %v2521_v41  ;;  %v3005_v45 = vpack.c.bf16 %v2581_v10, %v2581_v10  ;;  %v2231_v25 = vpop.f32.mrb[102].mxu1 }
 0x2c4   : > { %v3006_v26 = vpack.c.bf16 %v2582_v38, %v2582_v38  ;;  %v2280_v47 = vadd.f32 %v4363_v16, %v2256_v59  ;;  %v2257_v40 = vadd.f32 %v2231_v25, %v4355_v34  ;;  %v3464_v19 = vpop.f32.mrb[103].mxu1 }
 0x2c5   : > { %v2549_v49 = vsel %vm4565_vm13, %v2540_v55, %v2548_v53  ;;  %v2552_v56 = vshrl.u32 %v3004_v52, 16  ;;  %v2555_v23 = vshll.u32 %v3004_v52, 16  ;;  %v2950_v17 = vrot.slane %v3005_v45, 11 }
 0x2c6   : > { %2943 = vst [vmem:[%s4377_s19 + $0x28] sm:$0xf] %v2549_v49  ;;  %v2596_v51 = vrot.slane %v3006_v26, 7  ;;  %v2580_v1 = vadd.f32 %v4433_v43, %v2280_v47  ;;  %v2619_v21 = vadd.f32 %v2613_v15, %v2280_v47  ;;  %v2281_v3 = vadd.f32 %v4363_v16, %v2257_v40 }
 0x2c7   : > { %v2554_v60 = vrot.slane %v2552_v56, 6  ;;  %v2557_v12 = vrot.slane %v2555_v23, 7  ;;  %v2550_v6 = vrot.slane %v2548_v53, 4 }
 0x2c8   : > { %v2597_v34 = vsel %vm4566_vm12, %v2950_v17, %v2596_v51  ;;  %v2583_v42 = vmax.f32 %v2580_v1, 0.0  ;;  %v2622_v0 = vmax.f32 %v2619_v21, 0.0  ;;  %v2620_v46 = vadd.f32 %v2615_v62, %v2281_v3 }
 0x2c9   : > { %v2558_v7 = vor.u32 %v2557_v12, %v2554_v60  ;;  %2951 = vst [vmem:[%s4377_s19 + $0x30] sm:$0xf] %v2597_v34  ;;  %v2236_v27 = vpop.f32.mrb[104].mxu1  ;;  %v2598_v29 = vrot.slane %v2596_v51, 4 }
 0x2ca   : > { %v3007_v2 = vpack.c.bf16 %v2583_v42, %v2583_v42  ;;  %v2258_v43 = vadd.f32 %v2236_v27, %v4357_v14  ;;  %v3467_v11 = vpop.f32.mrb[105].mxu1  ;;  %v3008_v13 = vpack.c.bf16 %v2622_v0, %v2622_v0  ;;  %v2623_v58 = vmax.f32 %v2620_v46, 0.0 }
 0x2cb   : > { %v2559_v37 = vsel %vm4565_vm13, %v2550_v6, %v2558_v7  ;;  %v2239_v35 = vpop.f32.mrb[106].mxu1 }
 0x2cc   : > { %2944 = vst [vmem:[%s4377_s19 + $0x2c] sm:$0xf] %v2559_v37  ;;  %v2599_v50 = vrot.slane %v3007_v2, 7  ;;  %v2282_v20 = vadd.f32 %v4363_v16, %v2258_v43  ;;  %v3468_v22 = vpop.f32.mrb[107].mxu1  ;;  %v3009_v57 = vpack.c.bf16 %v2623_v58, %v2623_v58  ;;  %v2636_v14 = vshrl.u32 %v3008_v13, 16 }
 0x2ce   : > { %v2600_v54 = vsel %vm4566_vm12, %v2598_v29, %v2599_v50  ;;  %v2621_v24 = vadd.f32 %v2614_v32, %v2282_v20  ;;  %v2641_v8 = vshrl.u32 %v3009_v57, 16  ;;  %v2644_v5 = vshll.u32 %v3009_v57, 16 }
 0x2cf   : > { %2952 = vst [vmem:[%s4377_s19 + $0x34] sm:$0xf] %v2600_v54  ;;  %v2958_v28 = vrot.slane %v2636_v14, 11 }
 0x2d0   : > { %v2624_v30 = vmax.f32 %v2621_v24, 0.0  ;;  %v2643_v48 = vrot.slane %v2641_v8, 7 }
 0x2d2   : > { %v3010_v18 = vpack.c.bf16 %v2624_v30, %v2624_v30  ;;  %v2646_v9 = vor.u32 %v2644_v5, %v2643_v48  ;;  %v2648_v31 = vrot.slane %v2643_v48, 4 }
 0x2d4   : > { %v2650_v44 = vshrl.u32 %v3010_v18, 16  ;;  %v2647_v16 = vsel %vm3689_vm14, %v2958_v28, %v2646_v9  ;;  %v2653_v15 = vshll.u32 %v3010_v18, 16 }
 0x2d5   : > { %2959 = vst [vmem:[%s4377_s19 + $0x38] sm:$0xf] %v2647_v16 }
 0x2d6   : > { %v2652_v4 = vrot.slane %v2650_v44, 7 }
 0x2d8   : > { %v2655_v36 = vor.u32 %v2653_v15, %v2652_v4 }
 0x2da   : > { %v2656_v32 = vsel %vm3689_vm14, %v2648_v31, %v2655_v36 }
 0x2db   : > { %2960 = vst [vmem:[%s4377_s19 + $0x3c] sm:$0xf] %v2656_v32 }
 0x2dc PF: > { %s15_s18 = sadd.s32 1, %s3556_s18  }
 0x2dd   : > { %p12_p4 = scmp.ge.s32.totalorder %s15_s18, 4  }
 0x2df   :  { %14 = sbr.rel (!%p12_p4) target bundleno = 1 (0x1), region = 88 }

</bundles_post_ra>
